<compile_context>
chip_gen: v7x
topology: tpu7x:2x2x1
jax: 0.10.0
libtpu: 0.0.40
codegen_flags: <defaults>
</compile_context>

<pallas_src>
import functools

import jax
import jax.numpy as jnp
from jax.experimental import pallas as pl
from jax.experimental.pallas import tpu as pltpu


# ----------------------------------------------------------------------------
# Fused Pallas kernel
# ----------------------------------------------------------------------------
def _build_fused_kernel(num_layers, seq_len, batch, pred_len):
    """Build a fused forward kernel for fixed (static) sizes.

    Kernel argument layout (all refs):
      x_ref                         (T*B, In)   time-major, row = t*B + b
      for each lstm_pre layer l:    w_ih_t (In_l, 4H), w_hh_t (H, 4H), b (1, 4H)
      for each lstm_post layer l:   w_ih_t (In_l, 4H), w_hh_t (H, 4H), b (1, 4H)
      fc_pre_w (H, O), fc_pre_b (1, O), fc_post_w (H, O), fc_post_b (1, O)
      out_ref                       (pred_len, B, O)
      seq_scr                       (T*B, H)    VMEM scratch (inter-layer seq)
    """
    NL, T, B = num_layers, seq_len, batch

    def kernel(*args):
        x_ref = args[0]
        pre = [args[1 + 3 * l: 4 + 3 * l] for l in range(NL)]
        base = 1 + 3 * NL
        post = [args[base + 3 * l: base + 3 * l + 3] for l in range(NL)]
        base += 3 * NL
        fcpre_w_ref, fcpre_b_ref, fcpost_w_ref, fcpost_b_ref = args[base:base + 4]
        out_ref = args[base + 4]
        seq_scr = args[base + 5]

        H = pre[0][1].shape[0]          # w_hh_t is (H, 4H)

        def lstm_cell(xc, h, c, whh, b):
            # xc already holds x_t @ W_ih^T; add recurrent term and bias.
            gates = xc + jnp.dot(h, whh, preferred_element_type=jnp.float32) + b
            sig = jax.nn.sigmoid(gates)             # one EUP pass over (B, 4H)
            i_g = sig[:, 0 * H:1 * H]
            f_g = sig[:, 1 * H:2 * H]
            o_g = sig[:, 3 * H:4 * H]
            g_g = jnp.tanh(gates[:, 2 * H:3 * H])   # second EUP pass (g only)
            c_new = f_g * c + i_g * g_g
            h_new = o_g * jnp.tanh(c_new)
            return h_new, c_new

        # ---------------- encoder: lstm_pre, layer by layer -----------------
        h_list = [None] * NL
        c_list = [None] * NL
        for l in range(NL):
            wih = pre[l][0][...]                    # loaded once per layer
            whh = pre[l][1][...]
            b = pre[l][2][...]
            seq = x_ref[...] if l == 0 else seq_scr[...]       # (T*B, In_l)
            # Hoisted input projection: one batched MXU pass for the whole
            # sequence instead of one matmul per timestep.
            xw = jnp.dot(seq, wih, preferred_element_type=jnp.float32)  # (T*B, 4H)

            h = jnp.zeros((B, H), jnp.float32)
            c = jnp.zeros((B, H), jnp.float32)
            keep_seq = (l + 1) < NL
            for t in range(T):                      # fully unrolled (T small)
                h, c = lstm_cell(xw[t * B:(t + 1) * B, :], h, c, whh, b)
                if keep_seq:
                    seq_scr[t * B:(t + 1) * B, :] = h
            h_list[l] = h
            c_list[l] = c

        # ---- fc_pre head on the last-timestep hidden of the top layer ------
        out = (jnp.dot(h_list[-1], fcpre_w_ref[...],
                       preferred_element_type=jnp.float32) + fcpre_b_ref[...])
        out_ref[0] = out                            # predictions[:, 0, :]

        # ---------------- autoregressive decoder: lstm_post -----------------
        if pred_len > 1:
            post_w = [(p[0][...], p[1][...], p[2][...]) for p in post]
            w_fc = fcpost_w_ref[...]
            b_fc = fcpost_b_ref[...]
            for s in range(1, pred_len):            # fully unrolled
                inp = out                           # (B, O) previous prediction
                for l in range(NL):
                    wih_p, whh_p, b_p = post_w[l]
                    xc = jnp.dot(inp, wih_p, preferred_element_type=jnp.float32)
                    h_new, c_new = lstm_cell(xc, h_list[l], c_list[l], whh_p, b_p)
                    h_list[l] = h_new
                    c_list[l] = c_new
                    inp = h_new
                out = (jnp.dot(inp, w_fc, preferred_element_type=jnp.float32)
                       + b_fc)
                out_ref[s] = out                    # predictions[:, s, :]

    return kernel


# ----------------------------------------------------------------------------
# Forward pass (matches PricePredictor.forward, eval-mode semantics)
# ----------------------------------------------------------------------------
def price_predictor_forward(params, x, pred_len=1):
    """x: (batch, in_seq_len, input_size) -> (batch, pred_len, output_size)."""
    pre = params["lstm_pre"]
    post = params["lstm_post"]
    NL = len(pre)                                   # static (list length)
    H = pre[0][1].shape[0]                          # static (weight shape)
    O = params["fc_pre"][0].shape[1]
    B, T, _ = x.shape                               # static shapes

    # Single tiny XLA relayout to time-major 2-D (row = t*B + b); everything
    # else runs inside one fused Pallas kernel.
    x2d = jnp.transpose(x.astype(jnp.float32), (1, 0, 2)).reshape(T * B, -1)

    flat = [x2d]
    for layer in pre:
        flat += list(layer)
    for layer in post:
        flat += list(layer)
    flat += [params["fc_pre"][0], params["fc_pre"][1],
             params["fc_post"][0], params["fc_post"][1]]

    vmem = pl.BlockSpec(memory_space=pltpu.MemorySpace.VMEM)
    preds_tm = pl.pallas_call(
        _build_fused_kernel(NL, T, B, pred_len),
        out_shape=jax.ShapeDtypeStruct((pred_len, B, O), jnp.float32),
        in_specs=[vmem] * len(flat),
        out_specs=vmem,
        scratch_shapes=[pltpu.VMEM((T * B, H), jnp.float32)],
    )(*flat)

    return jnp.transpose(preds_tm, (1, 0, 2))       # (B, pred_len, O)


# ----------------------------------------------------------------------------
# Parameter init (deterministic, PyTorch-style uniform(-1/sqrt(H), 1/sqrt(H)))
# Params pytree contains ONLY arrays (no Python ints), so it is jit-safe.
# ----------------------------------------------------------------------------
def _init_lstm(key, input_size, hidden_size, num_layers):
    k = 1.0 / float(hidden_size) ** 0.5
    layers = []
    for l in range(num_layers):
        in_l = input_size if l == 0 else hidden_size
        key, k1, k2, k3, k4 = jax.random.split(key, 5)
        w_ih = jax.random.uniform(k1, (4 * hidden_size, in_l),
                                  minval=-k, maxval=k, dtype=jnp.float32)
        w_hh = jax.random.uniform(k2, (4 * hidden_size, hidden_size),
                                  minval=-k, maxval=k, dtype=jnp.float32)
        b_ih = jax.random.uniform(k3, (4 * hidden_size,),
                                  minval=-k, maxval=k, dtype=jnp.float32)
        b_hh = jax.random.uniform(k4, (4 * hidden_size,),
                                  minval=-k, maxval=k, dtype=jnp.float32)
        # pre-transpose for the kernel (In, 4H)/(H, 4H), fold the two biases
        layers.append((w_ih.T, w_hh.T, (b_ih + b_hh)[None, :]))
    return layers, key


def _init_linear(key, in_features, out_features):
    k = 1.0 / float(in_features) ** 0.5
    key, k1, k2 = jax.random.split(key, 3)
    w = jax.random.uniform(k1, (out_features, in_features),
                           minval=-k, maxval=k, dtype=jnp.float32)
    b = jax.random.uniform(k2, (out_features,),
                           minval=-k, maxval=k, dtype=jnp.float32)
    return (w.T, b[None, :]), key


def init_price_predictor(key, input_size, hidden_size, num_layers, output_size):
    lstm_pre, key = _init_lstm(key, input_size, hidden_size, num_layers)
    lstm_post, key = _init_lstm(key, output_size, hidden_size, num_layers)
    fc_pre, key = _init_linear(key, hidden_size, output_size)
    fc_post, key = _init_linear(key, hidden_size, output_size)
    return {
        "lstm_pre": lstm_pre,
        "lstm_post": lstm_post,
        "fc_pre": fc_pre,
        "fc_post": fc_post,
    }


# ----------------------------------------------------------------------------
if __name__ == "__main__":
    BATCH = 2
    IN_SEQ = 8
    INPUT_SIZE = 4
    HIDDEN_SIZE = 32
    NUM_LAYERS = 2
    OUTPUT_SIZE = 4
    PRED_LEN = 3

    key = jax.random.PRNGKey(0)
    key, xkey = jax.random.split(key)
    x = jax.random.normal(xkey, (BATCH, IN_SEQ, INPUT_SIZE), dtype=jnp.float32)

    params = init_price_predictor(key, INPUT_SIZE, HIDDEN_SIZE,
                                  NUM_LAYERS, OUTPUT_SIZE)

    fwd = jax.jit(functools.partial(price_predictor_forward,
                                    pred_len=PRED_LEN))
    preds = fwd(params, x)
    jax.block_until_ready(preds)

    assert preds.shape == (BATCH, PRED_LEN, OUTPUT_SIZE), preds.shape
    assert preds.dtype == jnp.float32
    assert bool(jnp.all(jnp.isfinite(preds)))
    print("KERNEL_OK")
</pallas_src>

<mosaic_0001>
module attributes {stable_mosaic.version = 11 : i64} {
  func.func @kernel(%arg0: memref<16x4xf32, #tpu.memory_space<vmem>>, %arg1: memref<4x128xf32, #tpu.memory_space<vmem>>, %arg2: memref<32x128xf32, #tpu.memory_space<vmem>>, %arg3: memref<1x128xf32, #tpu.memory_space<vmem>>, %arg4: memref<32x128xf32, #tpu.memory_space<vmem>>, %arg5: memref<32x128xf32, #tpu.memory_space<vmem>>, %arg6: memref<1x128xf32, #tpu.memory_space<vmem>>, %arg7: memref<4x128xf32, #tpu.memory_space<vmem>>, %arg8: memref<32x128xf32, #tpu.memory_space<vmem>>, %arg9: memref<1x128xf32, #tpu.memory_space<vmem>>, %arg10: memref<32x128xf32, #tpu.memory_space<vmem>>, %arg11: memref<32x128xf32, #tpu.memory_space<vmem>>, %arg12: memref<1x128xf32, #tpu.memory_space<vmem>>, %arg13: memref<32x4xf32, #tpu.memory_space<vmem>>, %arg14: memref<1x4xf32, #tpu.memory_space<vmem>>, %arg15: memref<32x4xf32, #tpu.memory_space<vmem>>, %arg16: memref<1x4xf32, #tpu.memory_space<vmem>>, %arg17: memref<3x2x4xf32, #tpu.memory_space<vmem>>, %arg18: memref<16x32xf32, #tpu.memory_space<vmem>>) attributes {dimension_semantics = [], scalar_prefetch = 0 : i64, scratch_operands = 1 : i64, tpu.core_type = #tpu.core_type<tc>} {
    %c0 = arith.constant 0 : index
    %c0_0 = arith.constant 0 : index
    %0 = vector.load %arg1[%c0, %c0_0] : memref<4x128xf32, #tpu.memory_space<vmem>>, vector<4x128xf32>
    %c0_1 = arith.constant 0 : index
    %c0_2 = arith.constant 0 : index
    %1 = vector.load %arg2[%c0_1, %c0_2] : memref<32x128xf32, #tpu.memory_space<vmem>>, vector<32x128xf32>
    %c0_3 = arith.constant 0 : index
    %c0_4 = arith.constant 0 : index
    %2 = vector.load %arg3[%c0_3, %c0_4] : memref<1x128xf32, #tpu.memory_space<vmem>>, vector<1x128xf32>
    %c0_5 = arith.constant 0 : index
    %c0_6 = arith.constant 0 : index
    %3 = vector.load %arg0[%c0_5, %c0_6] : memref<16x4xf32, #tpu.memory_space<vmem>>, vector<16x4xf32>
    %cst = arith.constant dense<0.000000e+00> : vector<16x128xf32>
    %4 = tpu.matmul %3, %0, %cst {dimension_numbers = #tpu.dot_dimension_numbers<[1], [0], [0], [1], [0, 0, 1, 1], [], []>} : vector<16x4xf32>, vector<4x128xf32>, vector<16x128xf32> -> vector<16x128xf32>
    %cst_7 = arith.constant 0.000000e+00 : f32
    %5 = vector.broadcast %cst_7 : f32 to vector<2x32xf32>
    %cst_8 = arith.constant 0.000000e+00 : f32
    %6 = vector.broadcast %cst_8 : f32 to vector<2x32xf32>
    %7 = vector.extract_strided_slice %4 {offsets = [0, 0], sizes = [2, 128], strides = [1, 1]} : vector<16x128xf32> to vector<2x128xf32>
    %cst_9 = arith.constant dense<0.000000e+00> : vector<2x128xf32>
    %8 = tpu.matmul %5, %1, %cst_9 {dimension_numbers = #tpu.dot_dimension_numbers<[1], [0], [0], [1], [0, 0, 1, 1], [], []>} : vector<2x32xf32>, vector<32x128xf32>, vector<2x128xf32> -> vector<2x128xf32>
    %9 = arith.addf %7, %8 : vector<2x128xf32>
    %10 = vector.broadcast %2 : vector<1x128xf32> to vector<2x128xf32>
    %11 = arith.addf %9, %10 : vector<2x128xf32>
    %12 = arith.negf %11 : vector<2x128xf32>
    %13 = math.exp %12 : vector<2x128xf32>
    %cst_10 = arith.constant 1.000000e+00 : f32
    %14 = vector.broadcast %cst_10 : f32 to vector<2x128xf32>
    %15 = arith.addf %14, %13 : vector<2x128xf32>
    %16 = arith.divf %14, %15 : vector<2x128xf32>
    %17 = vector.extract_strided_slice %16 {offsets = [0, 0], sizes = [2, 32], strides = [1, 1]} : vector<2x128xf32> to vector<2x32xf32>
    %18 = vector.extract_strided_slice %16 {offsets = [0, 32], sizes = [2, 32], strides = [1, 1]} : vector<2x128xf32> to vector<2x32xf32>
    %19 = vector.extract_strided_slice %16 {offsets = [0, 96], sizes = [2, 32], strides = [1, 1]} : vector<2x128xf32> to vector<2x32xf32>
    %20 = vector.extract_strided_slice %11 {offsets = [0, 64], sizes = [2, 32], strides = [1, 1]} : vector<2x128xf32> to vector<2x32xf32>
    %21 = math.tanh %20 : vector<2x32xf32>
    %22 = arith.mulf %18, %6 : vector<2x32xf32>
    %23 = arith.mulf %17, %21 : vector<2x32xf32>
    %24 = arith.addf %22, %23 : vector<2x32xf32>
    %25 = math.tanh %24 : vector<2x32xf32>
    %26 = arith.mulf %19, %25 : vector<2x32xf32>
    %c0_11 = arith.constant 0 : index
    %c0_12 = arith.constant 0 : index
    %27 = vector.load %arg18[%c0_11, %c0_12] : memref<16x32xf32, #tpu.memory_space<vmem>>, vector<2x32xf32>
    tpu.vector_store %arg18[%c0_11, %c0_12], %26 {strides = array<i32>} : memref<16x32xf32, #tpu.memory_space<vmem>>, vector<2x32xf32>,
    %28 = vector.extract_strided_slice %4 {offsets = [2, 0], sizes = [2, 128], strides = [1, 1]} : vector<16x128xf32> to vector<2x128xf32>
    %cst_13 = arith.constant dense<0.000000e+00> : vector<2x128xf32>
    %29 = tpu.matmul %26, %1, %cst_13 {dimension_numbers = #tpu.dot_dimension_numbers<[1], [0], [0], [1], [0, 0, 1, 1], [], []>} : vector<2x32xf32>, vector<32x128xf32>, vector<2x128xf32> -> vector<2x128xf32>
    %30 = arith.addf %28, %29 : vector<2x128xf32>
    %31 = vector.broadcast %2 : vector<1x128xf32> to vector<2x128xf32>
    %32 = arith.addf %30, %31 : vector<2x128xf32>
    %33 = arith.negf %32 : vector<2x128xf32>
    %34 = math.exp %33 : vector<2x128xf32>
    %cst_14 = arith.constant 1.000000e+00 : f32
    %35 = vector.broadcast %cst_14 : f32 to vector<2x128xf32>
    %36 = arith.addf %35, %34 : vector<2x128xf32>
    %37 = arith.divf %35, %36 : vector<2x128xf32>
    %38 = vector.extract_strided_slice %37 {offsets = [0, 0], sizes = [2, 32], strides = [1, 1]} : vector<2x128xf32> to vector<2x32xf32>
    %39 = vector.extract_strided_slice %37 {offsets = [0, 32], sizes = [2, 32], strides = [1, 1]} : vector<2x128xf32> to vector<2x32xf32>
    %40 = vector.extract_strided_slice %37 {offsets = [0, 96], sizes = [2, 32], strides = [1, 1]} : vector<2x128xf32> to vector<2x32xf32>
    %41 = vector.extract_strided_slice %32 {offsets = [0, 64], sizes = [2, 32], strides = [1, 1]} : vector<2x128xf32> to vector<2x32xf32>
    %42 = math.tanh %41 : vector<2x32xf32>
    %43 = arith.mulf %39, %24 : vector<2x32xf32>
    %44 = arith.mulf %38, %42 : vector<2x32xf32>
    %45 = arith.addf %43, %44 : vector<2x32xf32>
    %46 = math.tanh %45 : vector<2x32xf32>
    %47 = arith.mulf %40, %46 : vector<2x32xf32>
    %c2 = arith.constant 2 : index
    %c0_15 = arith.constant 0 : index
    %48 = vector.load %arg18[%c2, %c0_15] : memref<16x32xf32, #tpu.memory_space<vmem>>, vector<2x32xf32>
    tpu.vector_store %arg18[%c2, %c0_15], %47 {strides = array<i32>} : memref<16x32xf32, #tpu.memory_space<vmem>>, vector<2x32xf32>,
    %49 = vector.extract_strided_slice %4 {offsets = [4, 0], sizes = [2, 128], strides = [1, 1]} : vector<16x128xf32> to vector<2x128xf32>
    %cst_16 = arith.constant dense<0.000000e+00> : vector<2x128xf32>
    %50 = tpu.matmul %47, %1, %cst_16 {dimension_numbers = #tpu.dot_dimension_numbers<[1], [0], [0], [1], [0, 0, 1, 1], [], []>} : vector<2x32xf32>, vector<32x128xf32>, vector<2x128xf32> -> vector<2x128xf32>
    %51 = arith.addf %49, %50 : vector<2x128xf32>
    %52 = vector.broadcast %2 : vector<1x128xf32> to vector<2x128xf32>
    %53 = arith.addf %51, %52 : vector<2x128xf32>
    %54 = arith.negf %53 : vector<2x128xf32>
    %55 = math.exp %54 : vector<2x128xf32>
    %cst_17 = arith.constant 1.000000e+00 : f32
    %56 = vector.broadcast %cst_17 : f32 to vector<2x128xf32>
    %57 = arith.addf %56, %55 : vector<2x128xf32>
    %58 = arith.divf %56, %57 : vector<2x128xf32>
    %59 = vector.extract_strided_slice %58 {offsets = [0, 0], sizes = [2, 32], strides = [1, 1]} : vector<2x128xf32> to vector<2x32xf32>
    %60 = vector.extract_strided_slice %58 {offsets = [0, 32], sizes = [2, 32], strides = [1, 1]} : vector<2x128xf32> to vector<2x32xf32>
    %61 = vector.extract_strided_slice %58 {offsets = [0, 96], sizes = [2, 32], strides = [1, 1]} : vector<2x128xf32> to vector<2x32xf32>
    %62 = vector.extract_strided_slice %53 {offsets = [0, 64], sizes = [2, 32], strides = [1, 1]} : vector<2x128xf32> to vector<2x32xf32>
    %63 = math.tanh %62 : vector<2x32xf32>
    %64 = arith.mulf %60, %45 : vector<2x32xf32>
    %65 = arith.mulf %59, %63 : vector<2x32xf32>
    %66 = arith.addf %64, %65 : vector<2x32xf32>
    %67 = math.tanh %66 : vector<2x32xf32>
    %68 = arith.mulf %61, %67 : vector<2x32xf32>
    %c4 = arith.constant 4 : index
    %c0_18 = arith.constant 0 : index
    %69 = vector.load %arg18[%c4, %c0_18] : memref<16x32xf32, #tpu.memory_space<vmem>>, vector<2x32xf32>
    tpu.vector_store %arg18[%c4, %c0_18], %68 {strides = array<i32>} : memref<16x32xf32, #tpu.memory_space<vmem>>, vector<2x32xf32>,
    %70 = vector.extract_strided_slice %4 {offsets = [6, 0], sizes = [2, 128], strides = [1, 1]} : vector<16x128xf32> to vector<2x128xf32>
    %cst_19 = arith.constant dense<0.000000e+00> : vector<2x128xf32>
    %71 = tpu.matmul %68, %1, %cst_19 {dimension_numbers = #tpu.dot_dimension_numbers<[1], [0], [0], [1], [0, 0, 1, 1], [], []>} : vector<2x32xf32>, vector<32x128xf32>, vector<2x128xf32> -> vector<2x128xf32>
    %72 = arith.addf %70, %71 : vector<2x128xf32>
    %73 = vector.broadcast %2 : vector<1x128xf32> to vector<2x128xf32>
    %74 = arith.addf %72, %73 : vector<2x128xf32>
    %75 = arith.negf %74 : vector<2x128xf32>
    %76 = math.exp %75 : vector<2x128xf32>
    %cst_20 = arith.constant 1.000000e+00 : f32
    %77 = vector.broadcast %cst_20 : f32 to vector<2x128xf32>
    %78 = arith.addf %77, %76 : vector<2x128xf32>
    %79 = arith.divf %77, %78 : vector<2x128xf32>
    %80 = vector.extract_strided_slice %79 {offsets = [0, 0], sizes = [2, 32], strides = [1, 1]} : vector<2x128xf32> to vector<2x32xf32>
    %81 = vector.extract_strided_slice %79 {offsets = [0, 32], sizes = [2, 32], strides = [1, 1]} : vector<2x128xf32> to vector<2x32xf32>
    %82 = vector.extract_strided_slice %79 {offsets = [0, 96], sizes = [2, 32], strides = [1, 1]} : vector<2x128xf32> to vector<2x32xf32>
    %83 = vector.extract_strided_slice %74 {offsets = [0, 64], sizes = [2, 32], strides = [1, 1]} : vector<2x128xf32> to vector<2x32xf32>
    %84 = math.tanh %83 : vector<2x32xf32>
    %85 = arith.mulf %81, %66 : vector<2x32xf32>
    %86 = arith.mulf %80, %84 : vector<2x32xf32>
    %87 = arith.addf %85, %86 : vector<2x32xf32>
    %88 = math.tanh %87 : vector<2x32xf32>
    %89 = arith.mulf %82, %88 : vector<2x32xf32>
    %c6 = arith.constant 6 : index
    %c0_21 = arith.constant 0 : index
    %90 = vector.load %arg18[%c6, %c0_21] : memref<16x32xf32, #tpu.memory_space<vmem>>, vector<2x32xf32>
    tpu.vector_store %arg18[%c6, %c0_21], %89 {strides = array<i32>} : memref<16x32xf32, #tpu.memory_space<vmem>>, vector<2x32xf32>,
    %91 = vector.extract_strided_slice %4 {offsets = [8, 0], sizes = [2, 128], strides = [1, 1]} : vector<16x128xf32> to vector<2x128xf32>
    %cst_22 = arith.constant dense<0.000000e+00> : vector<2x128xf32>
    %92 = tpu.matmul %89, %1, %cst_22 {dimension_numbers = #tpu.dot_dimension_numbers<[1], [0], [0], [1], [0, 0, 1, 1], [], []>} : vector<2x32xf32>, vector<32x128xf32>, vector<2x128xf32> -> vector<2x128xf32>
    %93 = arith.addf %91, %92 : vector<2x128xf32>
    %94 = vector.broadcast %2 : vector<1x128xf32> to vector<2x128xf32>
    %95 = arith.addf %93, %94 : vector<2x128xf32>
    %96 = arith.negf %95 : vector<2x128xf32>
    %97 = math.exp %96 : vector<2x128xf32>
    %cst_23 = arith.constant 1.000000e+00 : f32
    %98 = vector.broadcast %cst_23 : f32 to vector<2x128xf32>
    %99 = arith.addf %98, %97 : vector<2x128xf32>
    %100 = arith.divf %98, %99 : vector<2x128xf32>
    %101 = vector.extract_strided_slice %100 {offsets = [0, 0], sizes = [2, 32], strides = [1, 1]} : vector<2x128xf32> to vector<2x32xf32>
    %102 = vector.extract_strided_slice %100 {offsets = [0, 32], sizes = [2, 32], strides = [1, 1]} : vector<2x128xf32> to vector<2x32xf32>
    %103 = vector.extract_strided_slice %100 {offsets = [0, 96], sizes = [2, 32], strides = [1, 1]} : vector<2x128xf32> to vector<2x32xf32>
    %104 = vector.extract_strided_slice %95 {offsets = [0, 64], sizes = [2, 32], strides = [1, 1]} : vector<2x128xf32> to vector<2x32xf32>
    %105 = math.tanh %104 : vector<2x32xf32>
    %106 = arith.mulf %102, %87 : vector<2x32xf32>
    %107 = arith.mulf %101, %105 : vector<2x32xf32>
    %108 = arith.addf %106, %107 : vector<2x32xf32>
    %109 = math.tanh %108 : vector<2x32xf32>
    %110 = arith.mulf %103, %109 : vector<2x32xf32>
    %c8 = arith.constant 8 : index
    %c0_24 = arith.constant 0 : index
    %111 = vector.load %arg18[%c8, %c0_24] : memref<16x32xf32, #tpu.memory_space<vmem>>, vector<2x32xf32>
    tpu.vector_store %arg18[%c8, %c0_24], %110 {strides = array<i32>} : memref<16x32xf32, #tpu.memory_space<vmem>>, vector<2x32xf32>,
    %112 = vector.extract_strided_slice %4 {offsets = [10, 0], sizes = [2, 128], strides = [1, 1]} : vector<16x128xf32> to vector<2x128xf32>
    %cst_25 = arith.constant dense<0.000000e+00> : vector<2x128xf32>
    %113 = tpu.matmul %110, %1, %cst_25 {dimension_numbers = #tpu.dot_dimension_numbers<[1], [0], [0], [1], [0, 0, 1, 1], [], []>} : vector<2x32xf32>, vector<32x128xf32>, vector<2x128xf32> -> vector<2x128xf32>
    %114 = arith.addf %112, %113 : vector<2x128xf32>
    %115 = vector.broadcast %2 : vector<1x128xf32> to vector<2x128xf32>
    %116 = arith.addf %114, %115 : vector<2x128xf32>
    %117 = arith.negf %116 : vector<2x128xf32>
    %118 = math.exp %117 : vector<2x128xf32>
    %cst_26 = arith.constant 1.000000e+00 : f32
    %119 = vector.broadcast %cst_26 : f32 to vector<2x128xf32>
    %120 = arith.addf %119, %118 : vector<2x128xf32>
    %121 = arith.divf %119, %120 : vector<2x128xf32>
    %122 = vector.extract_strided_slice %121 {offsets = [0, 0], sizes = [2, 32], strides = [1, 1]} : vector<2x128xf32> to vector<2x32xf32>
    %123 = vector.extract_strided_slice %121 {offsets = [0, 32], sizes = [2, 32], strides = [1, 1]} : vector<2x128xf32> to vector<2x32xf32>
    %124 = vector.extract_strided_slice %121 {offsets = [0, 96], sizes = [2, 32], strides = [1, 1]} : vector<2x128xf32> to vector<2x32xf32>
    %125 = vector.extract_strided_slice %116 {offsets = [0, 64], sizes = [2, 32], strides = [1, 1]} : vector<2x128xf32> to vector<2x32xf32>
    %126 = math.tanh %125 : vector<2x32xf32>
    %127 = arith.mulf %123, %108 : vector<2x32xf32>
    %128 = arith.mulf %122, %126 : vector<2x32xf32>
    %129 = arith.addf %127, %128 : vector<2x32xf32>
    %130 = math.tanh %129 : vector<2x32xf32>
    %131 = arith.mulf %124, %130 : vector<2x32xf32>
    %c10 = arith.constant 10 : index
    %c0_27 = arith.constant 0 : index
    %132 = vector.load %arg18[%c10, %c0_27] : memref<16x32xf32, #tpu.memory_space<vmem>>, vector<2x32xf32>
    tpu.vector_store %arg18[%c10, %c0_27], %131 {strides = array<i32>} : memref<16x32xf32, #tpu.memory_space<vmem>>, vector<2x32xf32>,
    %133 = vector.extract_strided_slice %4 {offsets = [12, 0], sizes = [2, 128], strides = [1, 1]} : vector<16x128xf32> to vector<2x128xf32>
    %cst_28 = arith.constant dense<0.000000e+00> : vector<2x128xf32>
    %134 = tpu.matmul %131, %1, %cst_28 {dimension_numbers = #tpu.dot_dimension_numbers<[1], [0], [0], [1], [0, 0, 1, 1], [], []>} : vector<2x32xf32>, vector<32x128xf32>, vector<2x128xf32> -> vector<2x128xf32>
    %135 = arith.addf %133, %134 : vector<2x128xf32>
    %136 = vector.broadcast %2 : vector<1x128xf32> to vector<2x128xf32>
    %137 = arith.addf %135, %136 : vector<2x128xf32>
    %138 = arith.negf %137 : vector<2x128xf32>
    %139 = math.exp %138 : vector<2x128xf32>
    %cst_29 = arith.constant 1.000000e+00 : f32
    %140 = vector.broadcast %cst_29 : f32 to vector<2x128xf32>
    %141 = arith.addf %140, %139 : vector<2x128xf32>
    %142 = arith.divf %140, %141 : vector<2x128xf32>
    %143 = vector.extract_strided_slice %142 {offsets = [0, 0], sizes = [2, 32], strides = [1, 1]} : vector<2x128xf32> to vector<2x32xf32>
    %144 = vector.extract_strided_slice %142 {offsets = [0, 32], sizes = [2, 32], strides = [1, 1]} : vector<2x128xf32> to vector<2x32xf32>
    %145 = vector.extract_strided_slice %142 {offsets = [0, 96], sizes = [2, 32], strides = [1, 1]} : vector<2x128xf32> to vector<2x32xf32>
    %146 = vector.extract_strided_slice %137 {offsets = [0, 64], sizes = [2, 32], strides = [1, 1]} : vector<2x128xf32> to vector<2x32xf32>
    %147 = math.tanh %146 : vector<2x32xf32>
    %148 = arith.mulf %144, %129 : vector<2x32xf32>
    %149 = arith.mulf %143, %147 : vector<2x32xf32>
    %150 = arith.addf %148, %149 : vector<2x32xf32>
    %151 = math.tanh %150 : vector<2x32xf32>
    %152 = arith.mulf %145, %151 : vector<2x32xf32>
    %c12 = arith.constant 12 : index
    %c0_30 = arith.constant 0 : index
    %153 = vector.load %arg18[%c12, %c0_30] : memref<16x32xf32, #tpu.memory_space<vmem>>, vector<2x32xf32>
    tpu.vector_store %arg18[%c12, %c0_30], %152 {strides = array<i32>} : memref<16x32xf32, #tpu.memory_space<vmem>>, vector<2x32xf32>,
    %154 = vector.extract_strided_slice %4 {offsets = [14, 0], sizes = [2, 128], strides = [1, 1]} : vector<16x128xf32> to vector<2x128xf32>
    %cst_31 = arith.constant dense<0.000000e+00> : vector<2x128xf32>
    %155 = tpu.matmul %152, %1, %cst_31 {dimension_numbers = #tpu.dot_dimension_numbers<[1], [0], [0], [1], [0, 0, 1, 1], [], []>} : vector<2x32xf32>, vector<32x128xf32>, vector<2x128xf32> -> vector<2x128xf32>
    %156 = arith.addf %154, %155 : vector<2x128xf32>
    %157 = vector.broadcast %2 : vector<1x128xf32> to vector<2x128xf32>
    %158 = arith.addf %156, %157 : vector<2x128xf32>
    %159 = arith.negf %158 : vector<2x128xf32>
    %160 = math.exp %159 : vector<2x128xf32>
    %cst_32 = arith.constant 1.000000e+00 : f32
    %161 = vector.broadcast %cst_32 : f32 to vector<2x128xf32>
    %162 = arith.addf %161, %160 : vector<2x128xf32>
    %163 = arith.divf %161, %162 : vector<2x128xf32>
    %164 = vector.extract_strided_slice %163 {offsets = [0, 0], sizes = [2, 32], strides = [1, 1]} : vector<2x128xf32> to vector<2x32xf32>
    %165 = vector.extract_strided_slice %163 {offsets = [0, 32], sizes = [2, 32], strides = [1, 1]} : vector<2x128xf32> to vector<2x32xf32>
    %166 = vector.extract_strided_slice %163 {offsets = [0, 96], sizes = [2, 32], strides = [1, 1]} : vector<2x128xf32> to vector<2x32xf32>
    %167 = vector.extract_strided_slice %158 {offsets = [0, 64], sizes = [2, 32], strides = [1, 1]} : vector<2x128xf32> to vector<2x32xf32>
    %168 = math.tanh %167 : vector<2x32xf32>
    %169 = arith.mulf %165, %150 : vector<2x32xf32>
    %170 = arith.mulf %164, %168 : vector<2x32xf32>
    %171 = arith.addf %169, %170 : vector<2x32xf32>
    %172 = math.tanh %171 : vector<2x32xf32>
    %173 = arith.mulf %166, %172 : vector<2x32xf32>
    %c14 = arith.constant 14 : index
    %c0_33 = arith.constant 0 : index
    %174 = vector.load %arg18[%c14, %c0_33] : memref<16x32xf32, #tpu.memory_space<vmem>>, vector<2x32xf32>
    tpu.vector_store %arg18[%c14, %c0_33], %173 {strides = array<i32>} : memref<16x32xf32, #tpu.memory_space<vmem>>, vector<2x32xf32>,
    %c0_34 = arith.constant 0 : index
    %c0_35 = arith.constant 0 : index
    %175 = vector.load %arg4[%c0_34, %c0_35] : memref<32x128xf32, #tpu.memory_space<vmem>>, vector<32x128xf32>
    %c0_36 = arith.constant 0 : index
    %c0_37 = arith.constant 0 : index
    %176 = vector.load %arg5[%c0_36, %c0_37] : memref<32x128xf32, #tpu.memory_space<vmem>>, vector<32x128xf32>
    %c0_38 = arith.constant 0 : index
    %c0_39 = arith.constant 0 : index
    %177 = vector.load %arg6[%c0_38, %c0_39] : memref<1x128xf32, #tpu.memory_space<vmem>>, vector<1x128xf32>
    %c0_40 = arith.constant 0 : index
    %c0_41 = arith.constant 0 : index
    %178 = vector.load %arg18[%c0_40, %c0_41] : memref<16x32xf32, #tpu.memory_space<vmem>>, vector<16x32xf32>
    %cst_42 = arith.constant dense<0.000000e+00> : vector<16x128xf32>
    %179 = tpu.matmul %178, %175, %cst_42 {dimension_numbers = #tpu.dot_dimension_numbers<[1], [0], [0], [1], [0, 0, 1, 1], [], []>} : vector<16x32xf32>, vector<32x128xf32>, vector<16x128xf32> -> vector<16x128xf32>
    %cst_43 = arith.constant 0.000000e+00 : f32
    %180 = vector.broadcast %cst_43 : f32 to vector<2x32xf32>
    %cst_44 = arith.constant 0.000000e+00 : f32
    %181 = vector.broadcast %cst_44 : f32 to vector<2x32xf32>
    %182 = vector.extract_strided_slice %179 {offsets = [0, 0], sizes = [2, 128], strides = [1, 1]} : vector<16x128xf32> to vector<2x128xf32>
    %cst_45 = arith.constant dense<0.000000e+00> : vector<2x128xf32>
    %183 = tpu.matmul %180, %176, %cst_45 {dimension_numbers = #tpu.dot_dimension_numbers<[1], [0], [0], [1], [0, 0, 1, 1], [], []>} : vector<2x32xf32>, vector<32x128xf32>, vector<2x128xf32> -> vector<2x128xf32>
    %184 = arith.addf %182, %183 : vector<2x128xf32>
    %185 = vector.broadcast %177 : vector<1x128xf32> to vector<2x128xf32>
    %186 = arith.addf %184, %185 : vector<2x128xf32>
    %187 = arith.negf %186 : vector<2x128xf32>
    %188 = math.exp %187 : vector<2x128xf32>
    %cst_46 = arith.constant 1.000000e+00 : f32
    %189 = vector.broadcast %cst_46 : f32 to vector<2x128xf32>
    %190 = arith.addf %189, %188 : vector<2x128xf32>
    %191 = arith.divf %189, %190 : vector<2x128xf32>
    %192 = vector.extract_strided_slice %191 {offsets = [0, 0], sizes = [2, 32], strides = [1, 1]} : vector<2x128xf32> to vector<2x32xf32>
    %193 = vector.extract_strided_slice %191 {offsets = [0, 32], sizes = [2, 32], strides = [1, 1]} : vector<2x128xf32> to vector<2x32xf32>
    %194 = vector.extract_strided_slice %191 {offsets = [0, 96], sizes = [2, 32], strides = [1, 1]} : vector<2x128xf32> to vector<2x32xf32>
    %195 = vector.extract_strided_slice %186 {offsets = [0, 64], sizes = [2, 32], strides = [1, 1]} : vector<2x128xf32> to vector<2x32xf32>
    %196 = math.tanh %195 : vector<2x32xf32>
    %197 = arith.mulf %193, %181 : vector<2x32xf32>
    %198 = arith.mulf %192, %196 : vector<2x32xf32>
    %199 = arith.addf %197, %198 : vector<2x32xf32>
    %200 = math.tanh %199 : vector<2x32xf32>
    %201 = arith.mulf %194, %200 : vector<2x32xf32>
    %202 = vector.extract_strided_slice %179 {offsets = [2, 0], sizes = [2, 128], strides = [1, 1]} : vector<16x128xf32> to vector<2x128xf32>
    %cst_47 = arith.constant dense<0.000000e+00> : vector<2x128xf32>
    %203 = tpu.matmul %201, %176, %cst_47 {dimension_numbers = #tpu.dot_dimension_numbers<[1], [0], [0], [1], [0, 0, 1, 1], [], []>} : vector<2x32xf32>, vector<32x128xf32>, vector<2x128xf32> -> vector<2x128xf32>
    %204 = arith.addf %202, %203 : vector<2x128xf32>
    %205 = vector.broadcast %177 : vector<1x128xf32> to vector<2x128xf32>
    %206 = arith.addf %204, %205 : vector<2x128xf32>
    %207 = arith.negf %206 : vector<2x128xf32>
    %208 = math.exp %207 : vector<2x128xf32>
    %cst_48 = arith.constant 1.000000e+00 : f32
    %209 = vector.broadcast %cst_48 : f32 to vector<2x128xf32>
    %210 = arith.addf %209, %208 : vector<2x128xf32>
    %211 = arith.divf %209, %210 : vector<2x128xf32>
    %212 = vector.extract_strided_slice %211 {offsets = [0, 0], sizes = [2, 32], strides = [1, 1]} : vector<2x128xf32> to vector<2x32xf32>
    %213 = vector.extract_strided_slice %211 {offsets = [0, 32], sizes = [2, 32], strides = [1, 1]} : vector<2x128xf32> to vector<2x32xf32>
    %214 = vector.extract_strided_slice %211 {offsets = [0, 96], sizes = [2, 32], strides = [1, 1]} : vector<2x128xf32> to vector<2x32xf32>
    %215 = vector.extract_strided_slice %206 {offsets = [0, 64], sizes = [2, 32], strides = [1, 1]} : vector<2x128xf32> to vector<2x32xf32>
    %216 = math.tanh %215 : vector<2x32xf32>
    %217 = arith.mulf %213, %199 : vector<2x32xf32>
    %218 = arith.mulf %212, %216 : vector<2x32xf32>
    %219 = arith.addf %217, %218 : vector<2x32xf32>
    %220 = math.tanh %219 : vector<2x32xf32>
    %221 = arith.mulf %214, %220 : vector<2x32xf32>
    %222 = vector.extract_strided_slice %179 {offsets = [4, 0], sizes = [2, 128], strides = [1, 1]} : vector<16x128xf32> to vector<2x128xf32>
    %cst_49 = arith.constant dense<0.000000e+00> : vector<2x128xf32>
    %223 = tpu.matmul %221, %176, %cst_49 {dimension_numbers = #tpu.dot_dimension_numbers<[1], [0], [0], [1], [0, 0, 1, 1], [], []>} : vector<2x32xf32>, vector<32x128xf32>, vector<2x128xf32> -> vector<2x128xf32>
    %224 = arith.addf %222, %223 : vector<2x128xf32>
    %225 = vector.broadcast %177 : vector<1x128xf32> to vector<2x128xf32>
    %226 = arith.addf %224, %225 : vector<2x128xf32>
    %227 = arith.negf %226 : vector<2x128xf32>
    %228 = math.exp %227 : vector<2x128xf32>
    %cst_50 = arith.constant 1.000000e+00 : f32
    %229 = vector.broadcast %cst_50 : f32 to vector<2x128xf32>
    %230 = arith.addf %229, %228 : vector<2x128xf32>
    %231 = arith.divf %229, %230 : vector<2x128xf32>
    %232 = vector.extract_strided_slice %231 {offsets = [0, 0], sizes = [2, 32], strides = [1, 1]} : vector<2x128xf32> to vector<2x32xf32>
    %233 = vector.extract_strided_slice %231 {offsets = [0, 32], sizes = [2, 32], strides = [1, 1]} : vector<2x128xf32> to vector<2x32xf32>
    %234 = vector.extract_strided_slice %231 {offsets = [0, 96], sizes = [2, 32], strides = [1, 1]} : vector<2x128xf32> to vector<2x32xf32>
    %235 = vector.extract_strided_slice %226 {offsets = [0, 64], sizes = [2, 32], strides = [1, 1]} : vector<2x128xf32> to vector<2x32xf32>
    %236 = math.tanh %235 : vector<2x32xf32>
    %237 = arith.mulf %233, %219 : vector<2x32xf32>
    %238 = arith.mulf %232, %236 : vector<2x32xf32>
    %239 = arith.addf %237, %238 : vector<2x32xf32>
    %240 = math.tanh %239 : vector<2x32xf32>
    %241 = arith.mulf %234, %240 : vector<2x32xf32>
    %242 = vector.extract_strided_slice %179 {offsets = [6, 0], sizes = [2, 128], strides = [1, 1]} : vector<16x128xf32> to vector<2x128xf32>
    %cst_51 = arith.constant dense<0.000000e+00> : vector<2x128xf32>
    %243 = tpu.matmul %241, %176, %cst_51 {dimension_numbers = #tpu.dot_dimension_numbers<[1], [0], [0], [1], [0, 0, 1, 1], [], []>} : vector<2x32xf32>, vector<32x128xf32>, vector<2x128xf32> -> vector<2x128xf32>
    %244 = arith.addf %242, %243 : vector<2x128xf32>
    %245 = vector.broadcast %177 : vector<1x128xf32> to vector<2x128xf32>
    %246 = arith.addf %244, %245 : vector<2x128xf32>
    %247 = arith.negf %246 : vector<2x128xf32>
    %248 = math.exp %247 : vector<2x128xf32>
    %cst_52 = arith.constant 1.000000e+00 : f32
    %249 = vector.broadcast %cst_52 : f32 to vector<2x128xf32>
    %250 = arith.addf %249, %248 : vector<2x128xf32>
    %251 = arith.divf %249, %250 : vector<2x128xf32>
    %252 = vector.extract_strided_slice %251 {offsets = [0, 0], sizes = [2, 32], strides = [1, 1]} : vector<2x128xf32> to vector<2x32xf32>
    %253 = vector.extract_strided_slice %251 {offsets = [0, 32], sizes = [2, 32], strides = [1, 1]} : vector<2x128xf32> to vector<2x32xf32>
    %254 = vector.extract_strided_slice %251 {offsets = [0, 96], sizes = [2, 32], strides = [1, 1]} : vector<2x128xf32> to vector<2x32xf32>
    %255 = vector.extract_strided_slice %246 {offsets = [0, 64], sizes = [2, 32], strides = [1, 1]} : vector<2x128xf32> to vector<2x32xf32>
    %256 = math.tanh %255 : vector<2x32xf32>
    %257 = arith.mulf %253, %239 : vector<2x32xf32>
    %258 = arith.mulf %252, %256 : vector<2x32xf32>
    %259 = arith.addf %257, %258 : vector<2x32xf32>
    %260 = math.tanh %259 : vector<2x32xf32>
    %261 = arith.mulf %254, %260 : vector<2x32xf32>
    %262 = vector.extract_strided_slice %179 {offsets = [8, 0], sizes = [2, 128], strides = [1, 1]} : vector<16x128xf32> to vector<2x128xf32>
    %cst_53 = arith.constant dense<0.000000e+00> : vector<2x128xf32>
    %263 = tpu.matmul %261, %176, %cst_53 {dimension_numbers = #tpu.dot_dimension_numbers<[1], [0], [0], [1], [0, 0, 1, 1], [], []>} : vector<2x32xf32>, vector<32x128xf32>, vector<2x128xf32> -> vector<2x128xf32>
    %264 = arith.addf %262, %263 : vector<2x128xf32>
    %265 = vector.broadcast %177 : vector<1x128xf32> to vector<2x128xf32>
    %266 = arith.addf %264, %265 : vector<2x128xf32>
    %267 = arith.negf %266 : vector<2x128xf32>
    %268 = math.exp %267 : vector<2x128xf32>
    %cst_54 = arith.constant 1.000000e+00 : f32
    %269 = vector.broadcast %cst_54 : f32 to vector<2x128xf32>
    %270 = arith.addf %269, %268 : vector<2x128xf32>
    %271 = arith.divf %269, %270 : vector<2x128xf32>
    %272 = vector.extract_strided_slice %271 {offsets = [0, 0], sizes = [2, 32], strides = [1, 1]} : vector<2x128xf32> to vector<2x32xf32>
    %273 = vector.extract_strided_slice %271 {offsets = [0, 32], sizes = [2, 32], strides = [1, 1]} : vector<2x128xf32> to vector<2x32xf32>
    %274 = vector.extract_strided_slice %271 {offsets = [0, 96], sizes = [2, 32], strides = [1, 1]} : vector<2x128xf32> to vector<2x32xf32>
    %275 = vector.extract_strided_slice %266 {offsets = [0, 64], sizes = [2, 32], strides = [1, 1]} : vector<2x128xf32> to vector<2x32xf32>
    %276 = math.tanh %275 : vector<2x32xf32>
    %277 = arith.mulf %273, %259 : vector<2x32xf32>
    %278 = arith.mulf %272, %276 : vector<2x32xf32>
    %279 = arith.addf %277, %278 : vector<2x32xf32>
    %280 = math.tanh %279 : vector<2x32xf32>
    %281 = arith.mulf %274, %280 : vector<2x32xf32>
    %282 = vector.extract_strided_slice %179 {offsets = [10, 0], sizes = [2, 128], strides = [1, 1]} : vector<16x128xf32> to vector<2x128xf32>
    %cst_55 = arith.constant dense<0.000000e+00> : vector<2x128xf32>
    %283 = tpu.matmul %281, %176, %cst_55 {dimension_numbers = #tpu.dot_dimension_numbers<[1], [0], [0], [1], [0, 0, 1, 1], [], []>} : vector<2x32xf32>, vector<32x128xf32>, vector<2x128xf32> -> vector<2x128xf32>
    %284 = arith.addf %282, %283 : vector<2x128xf32>
    %285 = vector.broadcast %177 : vector<1x128xf32> to vector<2x128xf32>
    %286 = arith.addf %284, %285 : vector<2x128xf32>
    %287 = arith.negf %286 : vector<2x128xf32>
    %288 = math.exp %287 : vector<2x128xf32>
    %cst_56 = arith.constant 1.000000e+00 : f32
    %289 = vector.broadcast %cst_56 : f32 to vector<2x128xf32>
    %290 = arith.addf %289, %288 : vector<2x128xf32>
    %291 = arith.divf %289, %290 : vector<2x128xf32>
    %292 = vector.extract_strided_slice %291 {offsets = [0, 0], sizes = [2, 32], strides = [1, 1]} : vector<2x128xf32> to vector<2x32xf32>
    %293 = vector.extract_strided_slice %291 {offsets = [0, 32], sizes = [2, 32], strides = [1, 1]} : vector<2x128xf32> to vector<2x32xf32>
    %294 = vector.extract_strided_slice %291 {offsets = [0, 96], sizes = [2, 32], strides = [1, 1]} : vector<2x128xf32> to vector<2x32xf32>
    %295 = vector.extract_strided_slice %286 {offsets = [0, 64], sizes = [2, 32], strides = [1, 1]} : vector<2x128xf32> to vector<2x32xf32>
    %296 = math.tanh %295 : vector<2x32xf32>
    %297 = arith.mulf %293, %279 : vector<2x32xf32>
    %298 = arith.mulf %292, %296 : vector<2x32xf32>
    %299 = arith.addf %297, %298 : vector<2x32xf32>
    %300 = math.tanh %299 : vector<2x32xf32>
    %301 = arith.mulf %294, %300 : vector<2x32xf32>
    %302 = vector.extract_strided_slice %179 {offsets = [12, 0], sizes = [2, 128], strides = [1, 1]} : vector<16x128xf32> to vector<2x128xf32>
    %cst_57 = arith.constant dense<0.000000e+00> : vector<2x128xf32>
    %303 = tpu.matmul %301, %176, %cst_57 {dimension_numbers = #tpu.dot_dimension_numbers<[1], [0], [0], [1], [0, 0, 1, 1], [], []>} : vector<2x32xf32>, vector<32x128xf32>, vector<2x128xf32> -> vector<2x128xf32>
    %304 = arith.addf %302, %303 : vector<2x128xf32>
    %305 = vector.broadcast %177 : vector<1x128xf32> to vector<2x128xf32>
    %306 = arith.addf %304, %305 : vector<2x128xf32>
    %307 = arith.negf %306 : vector<2x128xf32>
    %308 = math.exp %307 : vector<2x128xf32>
    %cst_58 = arith.constant 1.000000e+00 : f32
    %309 = vector.broadcast %cst_58 : f32 to vector<2x128xf32>
    %310 = arith.addf %309, %308 : vector<2x128xf32>
    %311 = arith.divf %309, %310 : vector<2x128xf32>
    %312 = vector.extract_strided_slice %311 {offsets = [0, 0], sizes = [2, 32], strides = [1, 1]} : vector<2x128xf32> to vector<2x32xf32>
    %313 = vector.extract_strided_slice %311 {offsets = [0, 32], sizes = [2, 32], strides = [1, 1]} : vector<2x128xf32> to vector<2x32xf32>
    %314 = vector.extract_strided_slice %311 {offsets = [0, 96], sizes = [2, 32], strides = [1, 1]} : vector<2x128xf32> to vector<2x32xf32>
    %315 = vector.extract_strided_slice %306 {offsets = [0, 64], sizes = [2, 32], strides = [1, 1]} : vector<2x128xf32> to vector<2x32xf32>
    %316 = math.tanh %315 : vector<2x32xf32>
    %317 = arith.mulf %313, %299 : vector<2x32xf32>
    %318 = arith.mulf %312, %316 : vector<2x32xf32>
    %319 = arith.addf %317, %318 : vector<2x32xf32>
    %320 = math.tanh %319 : vector<2x32xf32>
    %321 = arith.mulf %314, %320 : vector<2x32xf32>
    %322 = vector.extract_strided_slice %179 {offsets = [14, 0], sizes = [2, 128], strides = [1, 1]} : vector<16x128xf32> to vector<2x128xf32>
    %cst_59 = arith.constant dense<0.000000e+00> : vector<2x128xf32>
    %323 = tpu.matmul %321, %176, %cst_59 {dimension_numbers = #tpu.dot_dimension_numbers<[1], [0], [0], [1], [0, 0, 1, 1], [], []>} : vector<2x32xf32>, vector<32x128xf32>, vector<2x128xf32> -> vector<2x128xf32>
    %324 = arith.addf %322, %323 : vector<2x128xf32>
    %325 = vector.broadcast %177 : vector<1x128xf32> to vector<2x128xf32>
    %326 = arith.addf %324, %325 : vector<2x128xf32>
    %327 = arith.negf %326 : vector<2x128xf32>
    %328 = math.exp %327 : vector<2x128xf32>
    %cst_60 = arith.constant 1.000000e+00 : f32
    %329 = vector.broadcast %cst_60 : f32 to vector<2x128xf32>
    %330 = arith.addf %329, %328 : vector<2x128xf32>
    %331 = arith.divf %329, %330 : vector<2x128xf32>
    %332 = vector.extract_strided_slice %331 {offsets = [0, 0], sizes = [2, 32], strides = [1, 1]} : vector<2x128xf32> to vector<2x32xf32>
    %333 = vector.extract_strided_slice %331 {offsets = [0, 32], sizes = [2, 32], strides = [1, 1]} : vector<2x128xf32> to vector<2x32xf32>
    %334 = vector.extract_strided_slice %331 {offsets = [0, 96], sizes = [2, 32], strides = [1, 1]} : vector<2x128xf32> to vector<2x32xf32>
    %335 = vector.extract_strided_slice %326 {offsets = [0, 64], sizes = [2, 32], strides = [1, 1]} : vector<2x128xf32> to vector<2x32xf32>
    %336 = math.tanh %335 : vector<2x32xf32>
    %337 = arith.mulf %333, %319 : vector<2x32xf32>
    %338 = arith.mulf %332, %336 : vector<2x32xf32>
    %339 = arith.addf %337, %338 : vector<2x32xf32>
    %340 = math.tanh %339 : vector<2x32xf32>
    %341 = arith.mulf %334, %340 : vector<2x32xf32>
    %c0_61 = arith.constant 0 : index
    %c0_62 = arith.constant 0 : index
    %342 = vector.load %arg13[%c0_61, %c0_62] : memref<32x4xf32, #tpu.memory_space<vmem>>, vector<32x4xf32>
    %cst_63 = arith.constant dense<0.000000e+00> : vector<2x4xf32>
    %343 = tpu.matmul %341, %342, %cst_63 {dimension_numbers = #tpu.dot_dimension_numbers<[1], [0], [0], [1], [0, 0, 1, 1], [], []>} : vector<2x32xf32>, vector<32x4xf32>, vector<2x4xf32> -> vector<2x4xf32>
    %c0_64 = arith.constant 0 : index
    %c0_65 = arith.constant 0 : index
    %344 = vector.load %arg14[%c0_64, %c0_65] : memref<1x4xf32, #tpu.memory_space<vmem>>, vector<1x4xf32>
    %345 = vector.broadcast %344 : vector<1x4xf32> to vector<2x4xf32>
    %346 = arith.addf %343, %345 : vector<2x4xf32>
    %c0_66 = arith.constant 0 : index
    %c0_67 = arith.constant 0 : index
    %c0_68 = arith.constant 0 : index
    %347 = vector.load %arg17[%c0_66, %c0_67, %c0_68] : memref<3x2x4xf32, #tpu.memory_space<vmem>>, vector<1x2x4xf32>
    %348 = vector.shape_cast %347 : vector<1x2x4xf32> to vector<2x4xf32>
    %349 = vector.shape_cast %346 : vector<2x4xf32> to vector<1x2x4xf32>
    tpu.vector_store %arg17[%c0_66, %c0_67, %c0_68], %349 {strides = array<i32>} : memref<3x2x4xf32, #tpu.memory_space<vmem>>, vector<1x2x4xf32>,
    %c0_69 = arith.constant 0 : index
    %c0_70 = arith.constant 0 : index
    %350 = vector.load %arg7[%c0_69, %c0_70] : memref<4x128xf32, #tpu.memory_space<vmem>>, vector<4x128xf32>
    %c0_71 = arith.constant 0 : index
    %c0_72 = arith.constant 0 : index
    %351 = vector.load %arg8[%c0_71, %c0_72] : memref<32x128xf32, #tpu.memory_space<vmem>>, vector<32x128xf32>
    %c0_73 = arith.constant 0 : index
    %c0_74 = arith.constant 0 : index
    %352 = vector.load %arg9[%c0_73, %c0_74] : memref<1x128xf32, #tpu.memory_space<vmem>>, vector<1x128xf32>
    %c0_75 = arith.constant 0 : index
    %c0_76 = arith.constant 0 : index
    %353 = vector.load %arg10[%c0_75, %c0_76] : memref<32x128xf32, #tpu.memory_space<vmem>>, vector<32x128xf32>
    %c0_77 = arith.constant 0 : index
    %c0_78 = arith.constant 0 : index
    %354 = vector.load %arg11[%c0_77, %c0_78] : memref<32x128xf32, #tpu.memory_space<vmem>>, vector<32x128xf32>
    %c0_79 = arith.constant 0 : index
    %c0_80 = arith.constant 0 : index
    %355 = vector.load %arg12[%c0_79, %c0_80] : memref<1x128xf32, #tpu.memory_space<vmem>>, vector<1x128xf32>
    %c0_81 = arith.constant 0 : index
    %c0_82 = arith.constant 0 : index
    %356 = vector.load %arg15[%c0_81, %c0_82] : memref<32x4xf32, #tpu.memory_space<vmem>>, vector<32x4xf32>
    %c0_83 = arith.constant 0 : index
    %c0_84 = arith.constant 0 : index
    %357 = vector.load %arg16[%c0_83, %c0_84] : memref<1x4xf32, #tpu.memory_space<vmem>>, vector<1x4xf32>
    %cst_85 = arith.constant dense<0.000000e+00> : vector<2x128xf32>
    %358 = tpu.matmul %346, %350, %cst_85 {dimension_numbers = #tpu.dot_dimension_numbers<[1], [0], [0], [1], [0, 0, 1, 1], [], []>} : vector<2x4xf32>, vector<4x128xf32>, vector<2x128xf32> -> vector<2x128xf32>
    %cst_86 = arith.constant dense<0.000000e+00> : vector<2x128xf32>
    %359 = tpu.matmul %173, %351, %cst_86 {dimension_numbers = #tpu.dot_dimension_numbers<[1], [0], [0], [1], [0, 0, 1, 1], [], []>} : vector<2x32xf32>, vector<32x128xf32>, vector<2x128xf32> -> vector<2x128xf32>
    %360 = arith.addf %358, %359 : vector<2x128xf32>
    %361 = vector.broadcast %352 : vector<1x128xf32> to vector<2x128xf32>
    %362 = arith.addf %360, %361 : vector<2x128xf32>
    %363 = arith.negf %362 : vector<2x128xf32>
    %364 = math.exp %363 : vector<2x128xf32>
    %cst_87 = arith.constant 1.000000e+00 : f32
    %365 = vector.broadcast %cst_87 : f32 to vector<2x128xf32>
    %366 = arith.addf %365, %364 : vector<2x128xf32>
    %367 = arith.divf %365, %366 : vector<2x128xf32>
    %368 = vector.extract_strided_slice %367 {offsets = [0, 0], sizes = [2, 32], strides = [1, 1]} : vector<2x128xf32> to vector<2x32xf32>
    %369 = vector.extract_strided_slice %367 {offsets = [0, 32], sizes = [2, 32], strides = [1, 1]} : vector<2x128xf32> to vector<2x32xf32>
    %370 = vector.extract_strided_slice %367 {offsets = [0, 96], sizes = [2, 32], strides = [1, 1]} : vector<2x128xf32> to vector<2x32xf32>
    %371 = vector.extract_strided_slice %362 {offsets = [0, 64], sizes = [2, 32], strides = [1, 1]} : vector<2x128xf32> to vector<2x32xf32>
    %372 = math.tanh %371 : vector<2x32xf32>
    %373 = arith.mulf %369, %171 : vector<2x32xf32>
    %374 = arith.mulf %368, %372 : vector<2x32xf32>
    %375 = arith.addf %373, %374 : vector<2x32xf32>
    %376 = math.tanh %375 : vector<2x32xf32>
    %377 = arith.mulf %370, %376 : vector<2x32xf32>
    %cst_88 = arith.constant dense<0.000000e+00> : vector<2x128xf32>
    %378 = tpu.matmul %377, %353, %cst_88 {dimension_numbers = #tpu.dot_dimension_numbers<[1], [0], [0], [1], [0, 0, 1, 1], [], []>} : vector<2x32xf32>, vector<32x128xf32>, vector<2x128xf32> -> vector<2x128xf32>
    %cst_89 = arith.constant dense<0.000000e+00> : vector<2x128xf32>
    %379 = tpu.matmul %341, %354, %cst_89 {dimension_numbers = #tpu.dot_dimension_numbers<[1], [0], [0], [1], [0, 0, 1, 1], [], []>} : vector<2x32xf32>, vector<32x128xf32>, vector<2x128xf32> -> vector<2x128xf32>
    %380 = arith.addf %378, %379 : vector<2x128xf32>
    %381 = vector.broadcast %355 : vector<1x128xf32> to vector<2x128xf32>
    %382 = arith.addf %380, %381 : vector<2x128xf32>
    %383 = arith.negf %382 : vector<2x128xf32>
    %384 = math.exp %383 : vector<2x128xf32>
    %cst_90 = arith.constant 1.000000e+00 : f32
    %385 = vector.broadcast %cst_90 : f32 to vector<2x128xf32>
    %386 = arith.addf %385, %384 : vector<2x128xf32>
    %387 = arith.divf %385, %386 : vector<2x128xf32>
    %388 = vector.extract_strided_slice %387 {offsets = [0, 0], sizes = [2, 32], strides = [1, 1]} : vector<2x128xf32> to vector<2x32xf32>
    %389 = vector.extract_strided_slice %387 {offsets = [0, 32], sizes = [2, 32], strides = [1, 1]} : vector<2x128xf32> to vector<2x32xf32>
    %390 = vector.extract_strided_slice %387 {offsets = [0, 96], sizes = [2, 32], strides = [1, 1]} : vector<2x128xf32> to vector<2x32xf32>
    %391 = vector.extract_strided_slice %382 {offsets = [0, 64], sizes = [2, 32], strides = [1, 1]} : vector<2x128xf32> to vector<2x32xf32>
    %392 = math.tanh %391 : vector<2x32xf32>
    %393 = arith.mulf %389, %339 : vector<2x32xf32>
    %394 = arith.mulf %388, %392 : vector<2x32xf32>
    %395 = arith.addf %393, %394 : vector<2x32xf32>
    %396 = math.tanh %395 : vector<2x32xf32>
    %397 = arith.mulf %390, %396 : vector<2x32xf32>
    %cst_91 = arith.constant dense<0.000000e+00> : vector<2x4xf32>
    %398 = tpu.matmul %397, %356, %cst_91 {dimension_numbers = #tpu.dot_dimension_numbers<[1], [0], [0], [1], [0, 0, 1, 1], [], []>} : vector<2x32xf32>, vector<32x4xf32>, vector<2x4xf32> -> vector<2x4xf32>
    %399 = vector.broadcast %357 : vector<1x4xf32> to vector<2x4xf32>
    %400 = arith.addf %398, %399 : vector<2x4xf32>
    %c1 = arith.constant 1 : index
    %c0_92 = arith.constant 0 : index
    %c0_93 = arith.constant 0 : index
    %401 = vector.load %arg17[%c1, %c0_92, %c0_93] : memref<3x2x4xf32, #tpu.memory_space<vmem>>, vector<1x2x4xf32>
    %402 = vector.shape_cast %401 : vector<1x2x4xf32> to vector<2x4xf32>
    %403 = vector.shape_cast %400 : vector<2x4xf32> to vector<1x2x4xf32>
    tpu.vector_store %arg17[%c1, %c0_92, %c0_93], %403 {strides = array<i32>} : memref<3x2x4xf32, #tpu.memory_space<vmem>>, vector<1x2x4xf32>,
    %cst_94 = arith.constant dense<0.000000e+00> : vector<2x128xf32>
    %404 = tpu.matmul %400, %350, %cst_94 {dimension_numbers = #tpu.dot_dimension_numbers<[1], [0], [0], [1], [0, 0, 1, 1], [], []>} : vector<2x4xf32>, vector<4x128xf32>, vector<2x128xf32> -> vector<2x128xf32>
    %cst_95 = arith.constant dense<0.000000e+00> : vector<2x128xf32>
    %405 = tpu.matmul %377, %351, %cst_95 {dimension_numbers = #tpu.dot_dimension_numbers<[1], [0], [0], [1], [0, 0, 1, 1], [], []>} : vector<2x32xf32>, vector<32x128xf32>, vector<2x128xf32> -> vector<2x128xf32>
    %406 = arith.addf %404, %405 : vector<2x128xf32>
    %407 = vector.broadcast %352 : vector<1x128xf32> to vector<2x128xf32>
    %408 = arith.addf %406, %407 : vector<2x128xf32>
    %409 = arith.negf %408 : vector<2x128xf32>
    %410 = math.exp %409 : vector<2x128xf32>
    %cst_96 = arith.constant 1.000000e+00 : f32
    %411 = vector.broadcast %cst_96 : f32 to vector<2x128xf32>
    %412 = arith.addf %411, %410 : vector<2x128xf32>
    %413 = arith.divf %411, %412 : vector<2x128xf32>
    %414 = vector.extract_strided_slice %413 {offsets = [0, 0], sizes = [2, 32], strides = [1, 1]} : vector<2x128xf32> to vector<2x32xf32>
    %415 = vector.extract_strided_slice %413 {offsets = [0, 32], sizes = [2, 32], strides = [1, 1]} : vector<2x128xf32> to vector<2x32xf32>
    %416 = vector.extract_strided_slice %413 {offsets = [0, 96], sizes = [2, 32], strides = [1, 1]} : vector<2x128xf32> to vector<2x32xf32>
    %417 = vector.extract_strided_slice %408 {offsets = [0, 64], sizes = [2, 32], strides = [1, 1]} : vector<2x128xf32> to vector<2x32xf32>
    %418 = math.tanh %417 : vector<2x32xf32>
    %419 = arith.mulf %415, %375 : vector<2x32xf32>
    %420 = arith.mulf %414, %418 : vector<2x32xf32>
    %421 = arith.addf %419, %420 : vector<2x32xf32>
    %422 = math.tanh %421 : vector<2x32xf32>
    %423 = arith.mulf %416, %422 : vector<2x32xf32>
    %cst_97 = arith.constant dense<0.000000e+00> : vector<2x128xf32>
    %424 = tpu.matmul %423, %353, %cst_97 {dimension_numbers = #tpu.dot_dimension_numbers<[1], [0], [0], [1], [0, 0, 1, 1], [], []>} : vector<2x32xf32>, vector<32x128xf32>, vector<2x128xf32> -> vector<2x128xf32>
    %cst_98 = arith.constant dense<0.000000e+00> : vector<2x128xf32>
    %425 = tpu.matmul %397, %354, %cst_98 {dimension_numbers = #tpu.dot_dimension_numbers<[1], [0], [0], [1], [0, 0, 1, 1], [], []>} : vector<2x32xf32>, vector<32x128xf32>, vector<2x128xf32> -> vector<2x128xf32>
    %426 = arith.addf %424, %425 : vector<2x128xf32>
    %427 = vector.broadcast %355 : vector<1x128xf32> to vector<2x128xf32>
    %428 = arith.addf %426, %427 : vector<2x128xf32>
    %429 = arith.negf %428 : vector<2x128xf32>
    %430 = math.exp %429 : vector<2x128xf32>
    %cst_99 = arith.constant 1.000000e+00 : f32
    %431 = vector.broadcast %cst_99 : f32 to vector<2x128xf32>
    %432 = arith.addf %431, %430 : vector<2x128xf32>
    %433 = arith.divf %431, %432 : vector<2x128xf32>
    %434 = vector.extract_strided_slice %433 {offsets = [0, 0], sizes = [2, 32], strides = [1, 1]} : vector<2x128xf32> to vector<2x32xf32>
    %435 = vector.extract_strided_slice %433 {offsets = [0, 32], sizes = [2, 32], strides = [1, 1]} : vector<2x128xf32> to vector<2x32xf32>
    %436 = vector.extract_strided_slice %433 {offsets = [0, 96], sizes = [2, 32], strides = [1, 1]} : vector<2x128xf32> to vector<2x32xf32>
    %437 = vector.extract_strided_slice %428 {offsets = [0, 64], sizes = [2, 32], strides = [1, 1]} : vector<2x128xf32> to vector<2x32xf32>
    %438 = math.tanh %437 : vector<2x32xf32>
    %439 = arith.mulf %435, %395 : vector<2x32xf32>
    %440 = arith.mulf %434, %438 : vector<2x32xf32>
    %441 = arith.addf %439, %440 : vector<2x32xf32>
    %442 = math.tanh %441 : vector<2x32xf32>
    %443 = arith.mulf %436, %442 : vector<2x32xf32>
    %cst_100 = arith.constant dense<0.000000e+00> : vector<2x4xf32>
    %444 = tpu.matmul %443, %356, %cst_100 {dimension_numbers = #tpu.dot_dimension_numbers<[1], [0], [0], [1], [0, 0, 1, 1], [], []>} : vector<2x32xf32>, vector<32x4xf32>, vector<2x4xf32> -> vector<2x4xf32>
    %445 = vector.broadcast %357 : vector<1x4xf32> to vector<2x4xf32>
    %446 = arith.addf %444, %445 : vector<2x4xf32>
    %c2_101 = arith.constant 2 : index
    %c0_102 = arith.constant 0 : index
    %c0_103 = arith.constant 0 : index
    %447 = vector.load %arg17[%c2_101, %c0_102, %c0_103] : memref<3x2x4xf32, #tpu.memory_space<vmem>>, vector<1x2x4xf32>
    %448 = vector.shape_cast %447 : vector<1x2x4xf32> to vector<2x4xf32>
    %449 = vector.shape_cast %446 : vector<2x4xf32> to vector<1x2x4xf32>
    tpu.vector_store %arg17[%c2_101, %c0_102, %c0_103], %449 {strides = array<i32>} : memref<3x2x4xf32, #tpu.memory_space<vmem>>, vector<1x2x4xf32>,
    return
  }
}

</mosaic_0001>

<bundles_post_ra>
// kernel: price_predictor_forward.1
= control target key start
LH: loop header
LB: loop body
LE: loop exit
PB: predicated region body
PF: predicated region fallthrough
CT: control target
= control target key end

     0   :  { %s4760_s0 = inlined_call_operand.vmem [shape: f32[16,4], index: 0, kind: input, shape index: {}]   ;;  %s4761_s1 = inlined_call_operand.vmem [shape: f32[4,128], index: 1, kind: input, shape index: {}]   ;;  %s4762_s2 = inlined_call_operand.vmem [shape: f32[32,128], index: 2, kind: input, shape index: {}]   ;;  %s4763_s3 = inlined_call_operand.vmem [shape: f32[1,128], index: 3, kind: input, shape index: {}]   ;;  %s4764_s4 = inlined_call_operand.vmem [shape: f32[32,128], index: 4, kind: input, shape index: {}]   ;;  %s4765_s5 = inlined_call_operand.vmem [shape: f32[32,128], index: 5, kind: input, shape index: {}]   ;;  %s4766_s6 = inlined_call_operand.vmem [shape: f32[1,128], index: 6, kind: input, shape index: {}]   ;;  %s4767_s7 = inlined_call_operand.hbm [shape: f32[4,128], index: 7, kind: input, shape index: {}]   ;;  %s4768_s8 = inlined_call_operand.hbm [shape: f32[32,128], index: 8, kind: input, shape index: {}]   ;;  %s4769_s9 = inlined_call_operand.hbm [shape: f32[1,128], index: 9, kind: input, shape index: {}]   ;;  %s4770_s10 = inlined_call_operand.vmem [shape: f32[32,128], index: 10, kind: input, shape index: {}]   ;;  %s4771_s11 = inlined_call_operand.hbm [shape: f32[32,128], index: 11, kind: input, shape index: {}]   ;;  %s4772_s12 = inlined_call_operand.hbm [shape: f32[1,128], index: 12, kind: input, shape index: {}]   ;;  %s4773_s13 = inlined_call_operand.vmem [shape: f32[32,4], index: 13, kind: input, shape index: {}]   ;;  %s4774_s14 = inlined_call_operand.hbm [shape: f32[1,4], index: 14, kind: input, shape index: {}]   ;;  %s4775_s15 = inlined_call_operand.vmem [shape: f32[32,4], index: 15, kind: input, shape index: {}]   ;;  %s4776_s16 = inlined_call_operand.hbm [shape: f32[1,4], index: 16, kind: input, shape index: {}]   ;;  %s4777_s17 = inlined_call_operand.hbm [shape: f32[3,2,4], index: 17, kind: output, shape index: {}]  }
   0x1   :  { %4780 = sst [smem:[#allocation21_spill]] %s4760_s0 }
   0x2   :  { %4781 = sst [smem:[#allocation22_spill]] %s4761_s1 }
   0x3   :  { %4782 = sst [smem:[#allocation23_spill]] %s4777_s17 }
   0x4   :  { %22 = vsyncpa [#allocation4], 0 }
   0x5   :  { %23 = vsyncpa [#allocation7], 0 }
   0x6   :  { %24 = vsyncpa [#allocation10], 0 }
   0x7   :  { %25 = vsyncpa [#allocation13], 0 }
   0x8   :  { %26 = vsyncpa [#allocation5], 0  ;;  %s4079_s24 = smov [#allocation6]   ;;  %s3893_s28 = scalar_lea.hbm %s4768_s8, 512 }
   0x9   :  { %s56_s25 = sshll.u32 %s4079_s24, 4  ;;  %p3894_p0 = scmp.ne.s32.totalorder %s4768_s8, %s3893_s28  ;;  %s57_s25 = int_to_ptr.vmem [resolvable:$true] %s56_s25 }
   0xa   :  { %p3897_p1 = scmp.lt.u32.totalorder %s3893_s28, %s4768_s8 }
   0xc   :  { %p3899_p2 = pnand %p3897_p1, %p3894_p0 }
   0xe   :  { %3902 = shalt.err (!%p3899_p2)
}
   0xf   :  { %s3903_s19 = scalar_lea.vmem %s57_s25, 512  ;;  %p3908_p4 = scmp.lt.s32.totalorder %s57_s25, %s57_s25 }
  0x10   :  { %p3904_p3 = scmp.ne.s32.totalorder %s57_s25, %s3903_s19  ;;  %p3909_p5 = scmp.lt.s32.totalorder %s3903_s19, %s3903_s19 }
  0x12   :  { %p3910_p6 = por %p3909_p5, %p3908_p4 }
  0x14   :  { %p3911_p7 = pnand %p3910_p6, %p3904_p3 }
  0x16   :  { %3914 = shalt.err (!%p3911_p7)
}
  0x17   :  { %s4080_s1 = smov 128   ;;  %s4081_s20 = smov 8  }
  0x18   :  { %62 = dma.hbm_to_vmem [thread:$0]  %s4768_s8, 512, %s57_s25, [#allocation7], %s4080_s1, %s4080_s1, %s4081_s20  }
  0x19   :  { %s4082_s23 = smov [#allocation9]   ;;  %s4083_s26 = smov [#allocation12]  }
  0x1a   :  { %s80_s24 = sshll.u32 %s4082_s23, 4  ;;  %s105_s27 = sshll.u32 %s4083_s26, 4  ;;  %s81_s24 = int_to_ptr.vmem [resolvable:$true] %s80_s24  ;;  %s106_s27 = int_to_ptr.vmem [resolvable:$true] %s105_s27 }
  0x1b   :  { %s3915_s0 = scalar_lea.hbm %s4771_s11, 512 }
  0x1c   :  { %p3916_p8 = scmp.ne.s32.totalorder %s4771_s11, %s3915_s0  ;;  %p3919_p9 = scmp.lt.u32.totalorder %s3915_s0, %s4771_s11 }
  0x1e   :  { %p3921_p10 = pnand %p3919_p9, %p3916_p8 }
  0x20   :  { %3924 = shalt.err (!%p3921_p10)
}
  0x21   :  { %s3925_s8 = scalar_lea.vmem %s81_s24, 512  ;;  %p3930_p12 = scmp.lt.s32.totalorder %s81_s24, %s81_s24 }
  0x22   :  { %p3926_p11 = scmp.ne.s32.totalorder %s81_s24, %s3925_s8  ;;  %p3931_p13 = scmp.lt.s32.totalorder %s3925_s8, %s3925_s8 }
  0x24   :  { %p3932_p0 = por %p3931_p13, %p3930_p12 }
  0x26   :  { %p3933_p1 = pnand %p3932_p0, %p3926_p11 }
  0x28   :  { %3936 = shalt.err (!%p3933_p1)
}
  0x29   :  { %86 = dma.hbm_to_vmem [thread:$0]  %s4771_s11, 512, %s81_s24, [#allocation10], %s4080_s1, %s4080_s1, %s4081_s20  }
  0x2a   :  { %s3937_s26 = scalar_lea.hbm %s4774_s14, 16 }
  0x2b   :  { %p3938_p2 = scmp.ne.s32.totalorder %s4774_s14, %s3937_s26  ;;  %p3941_p3 = scmp.lt.u32.totalorder %s3937_s26, %s4774_s14 }
  0x2d   :  { %p3943_p4 = pnand %p3941_p3, %p3938_p2 }
  0x2f   :  { %3946 = shalt.err (!%p3943_p4)
}
  0x30   :  { %s3947_s30 = scalar_lea.vmem %s106_s27, 16  ;;  %s3951_s18 = scalar_lea.vmem %s106_s27, 32 }
  0x31   :  { %p3948_p5 = scmp.ne.s32.totalorder %s106_s27, %s3947_s30  ;;  %p3952_p6 = scmp.lt.s32.totalorder %s106_s27, %s106_s27 }
  0x32   :  { %p3953_p7 = scmp.lt.s32.totalorder %s3951_s18, %s3947_s30 }
  0x34   :  { %p3954_p8 = por %p3953_p7, %p3952_p6 }
  0x36   :  { %p3955_p9 = pnand %p3954_p8, %p3948_p5 }
  0x38   :  { %3958 = shalt.err (!%p3955_p9)
}
  0x39   :  { %108 = dma.hbm_to_vmem [thread:$0]  %s4774_s14, 16, %s106_s27, [#allocation13]  }
  0x3a   :  { %s4084_s20 = smov [#allocation3]   ;;  %s4085_s19 = smov [#allocation8]  }
  0x3b   :  { %s47_s24 = sshll.u32 %s4084_s20, 4  ;;  %s69_s8 = sshll.u32 %s4085_s19, 4  ;;  %s48_s24 = int_to_ptr.vmem [resolvable:$true] %s47_s24  ;;  %s70_s8 = int_to_ptr.vmem [resolvable:$true] %s69_s8 }
  0x3c   :  { %s3959_s22 = scalar_lea.hbm %s4767_s7, 64 }
  0x3d   :  { %p3960_p10 = scmp.ne.s32.totalorder %s4767_s7, %s3959_s22  ;;  %p3963_p11 = scmp.lt.u32.totalorder %s3959_s22, %s4767_s7 }
  0x3f   :  { %p3965_p12 = pnand %p3963_p11, %p3960_p10 }
  0x41   :  { %3968 = shalt.err (!%p3965_p12)
}
  0x42   :  { %s3969_s14 = scalar_lea.vmem %s48_s24, 64  ;;  %p3974_p0 = scmp.lt.s32.totalorder %s48_s24, %s48_s24 }
  0x43   :  { %p3970_p13 = scmp.ne.s32.totalorder %s48_s24, %s3969_s14  ;;  %p3975_p1 = scmp.lt.s32.totalorder %s3969_s14, %s3969_s14 }
  0x45   :  { %p3976_p2 = por %p3975_p1, %p3974_p0 }
  0x47   :  { %p3977_p3 = pnand %p3976_p2, %p3970_p13 }
  0x49   :  { %3980 = shalt.err (!%p3977_p3)
}
  0x4a   :  { %50 = dma.hbm_to_vmem [thread:$0]  %s4767_s7, 64, %s48_s24, [#allocation4]  }
  0x4b   :  { %s3981_s18 = scalar_lea.hbm %s4769_s9, 16 }
  0x4c   :  { %p3982_p4 = scmp.ne.s32.totalorder %s4769_s9, %s3981_s18  ;;  %p3985_p5 = scmp.lt.u32.totalorder %s3981_s18, %s4769_s9 }
  0x4e   :  { %p3987_p6 = pnand %p3985_p5, %p3982_p4 }
  0x50   :  { %3990 = shalt.err (!%p3987_p6)
}
  0x51   :  { %s3991_s25 = scalar_lea.vmem %s70_s8, 16  ;;  %s3995_s21 = scalar_lea.vmem %s70_s8, 32 }
  0x52   :  { %p3992_p7 = scmp.ne.s32.totalorder %s70_s8, %s3991_s25  ;;  %p3996_p8 = scmp.lt.s32.totalorder %s70_s8, %s70_s8 }
  0x53   :  { %p3997_p9 = scmp.lt.s32.totalorder %s3995_s21, %s3991_s25 }
  0x55   :  { %p3998_p10 = por %p3997_p9, %p3996_p8 }
  0x57   :  { %p3999_p11 = pnand %p3998_p10, %p3992_p7 }
  0x59   :  { %4002 = shalt.err (!%p3999_p11)
}
  0x5a   :  { %72 = dma.hbm_to_vmem [thread:$0]  %s4769_s9, 16, %s70_s8, [#allocation7]  }
  0x5b   :  { %s4086_s22 = smov [#allocation11]   ;;  %s4087_s26 = smov [#allocation14]  }
  0x5c   :  { %s93_s23 = sshll.u32 %s4086_s22, 4  ;;  %s117_s17 = sshll.u32 %s4087_s26, 4  ;;  %s94_s23 = int_to_ptr.vmem [resolvable:$true] %s93_s23  ;;  %s118_s17 = int_to_ptr.vmem [resolvable:$true] %s117_s17 }
  0x5d   :  { %s4003_s27 = scalar_lea.hbm %s4772_s12, 16 }
  0x5e   :  { %p4004_p12 = scmp.ne.s32.totalorder %s4772_s12, %s4003_s27  ;;  %p4007_p13 = scmp.lt.u32.totalorder %s4003_s27, %s4772_s12 }
  0x60   :  { %p4009_p0 = pnand %p4007_p13, %p4004_p12 }
  0x62   :  { %4012 = shalt.err (!%p4009_p0)
}
  0x63   :  { %s4013_s9 = scalar_lea.vmem %s94_s23, 16  ;;  %s4017_s8 = scalar_lea.vmem %s94_s23, 32 }
  0x64   :  { %p4014_p1 = scmp.ne.s32.totalorder %s94_s23, %s4013_s9  ;;  %p4018_p2 = scmp.lt.s32.totalorder %s94_s23, %s94_s23 }
  0x65   :  { %p4019_p3 = scmp.lt.s32.totalorder %s4017_s8, %s4013_s9 }
  0x67   :  { %p4020_p4 = por %p4019_p3, %p4018_p2 }
  0x69   :  { %p4021_p5 = pnand %p4020_p4, %p4014_p1 }
  0x6b   :  { %4024 = shalt.err (!%p4021_p5)
}
  0x6c   :  { %96 = dma.hbm_to_vmem [thread:$0]  %s4772_s12, 16, %s94_s23, [#allocation10]  }
  0x6d   :  { %s4025_s25 = scalar_lea.hbm %s4776_s16, 16 }
  0x6e   :  { %p4026_p6 = scmp.ne.s32.totalorder %s4776_s16, %s4025_s25  ;;  %p4029_p7 = scmp.lt.u32.totalorder %s4025_s25, %s4776_s16 }
  0x70   :  { %p4031_p8 = pnand %p4029_p7, %p4026_p6 }
  0x72   :  { %4034 = shalt.err (!%p4031_p8)
}
  0x73   :  { %s4035_s26 = scalar_lea.vmem %s118_s17, 16  ;;  %s4039_s28 = scalar_lea.vmem %s118_s17, 32 }
  0x74   :  { %p4036_p9 = scmp.ne.s32.totalorder %s118_s17, %s4035_s26  ;;  %p4040_p10 = scmp.lt.s32.totalorder %s118_s17, %s118_s17 }
  0x75   :  { %p4041_p11 = scmp.lt.s32.totalorder %s4039_s28, %s4035_s26 }
  0x77   :  { %p4042_p12 = por %p4041_p11, %p4040_p10 }
  0x79   :  { %p4043_p13 = pnand %p4042_p12, %p4036_p9 }
  0x7b   :  { %4046 = shalt.err (!%p4043_p13)
}
  0x7c   :  { %120 = dma.hbm_to_vmem [thread:$0]  %s4776_s16, 16, %s118_s17, [#allocation13]  }
  0x7d   :  { %4069 = dma.done.wait [#allocation4], 64  }
  0x7e   :  { %4070 = vsyncadd [#allocation4], 4294967232 }
  0x7f   :  { %4071 = dma.done.wait [#allocation7], 528  }
  0x80   :  { %4072 = vsyncadd [#allocation7], 4294966768 }
  0x81   :  { %4073 = dma.done.wait [#allocation10], 528  }
  0x82   :  { %4074 = vsyncadd [#allocation10], 4294966768 }
  0x83   :  { %4075 = dma.done.wait [#allocation13], 32  }
  0x84   :  { %4076 = vsyncadd [#allocation13], 4294967264  ;;  %v4088_v0 = vmov 0.0|0.0   ;;  %vm4089_vm0 = vmmov 0   ;;  %v4090_v1 = vmov 0.0   ;;  %vm157_vm1 = vcmask 1043456  }
  0x85   :  { %3559 = vmatprep.subr.bf16.mxu1 %v4088_v0  ;;  %3271 = vmatprep.mubr.msk.f32.mxu1 %vm4089_vm0, %v4090_v1  ;;  %vm150_vm2 = vcmask 31744   ;;  %v143_v2 = vld [vmem:[%s4762_s2] sm:$0xff]  ;;  %v144_v3 = vld [vmem:[%s4762_s2 + $0x8] sm:$0xff]  ;;  %s4783_s30 = sld [smem:[#allocation22_spill]]  ;;  %s4784_s8 = sld [smem:[#allocation21_spill]]  ;;  %v145_v7 = vld [vmem:[%s4762_s2 + $0x10] sm:$0xff] }
  0x86   :  { %v4281_v5 = vpack.c.bf16 %v144_v3, %v143_v2  ;;  %v146_v8 = vld [vmem:[%s4762_s2 + $0x18] sm:$0xff]  ;;  %v4326_v13 = vld [vmem:[%s4763_s3] ss:$0 sm:$0xff]  ;;  %s4091_s24 = smov 64   ;;  %s4092_s3 = smov 32   ;;  %vm346_vm3 = vcmask 254976  }
  0x87   :  { %v4299_v10 = vpack.c.bf16 %v146_v8, %v145_v7  ;;  %vm236_vm4 = vcmask 261120   ;;  %vm456_vm5 = vcmask 257026   ;;  %vm682_vm6 = vcmask 261126  }
  0x88   :  { %3561 = vmatpush3.bf16.msra.mxu1 %v4281_v5  ;;  %vm569_vm7 = vcmask 259076   ;;  %vm2158_vm8 = vcmask 25600  }
  0x89   :  { %3562 = vmatprep.subr.bf16.mxu1 %v4088_v0 }
  0x8b   :  { %v142_v4 = vld [vmem:[%s4783_s30] sm:$0xf]  ;;  %v149_v9 = vld [vmem:[%s4784_s8 + $0x8] sm:$0xff] }
  0x8c   :  { %3258 = vmatprep.subr.msk.mxu0 %vm157_vm1, %v142_v4  ;;  %v148_v6 = vld [vmem:[%s4784_s8] sm:$0xff]  ;;  %3564 = vmatpush3.bf16.msra.mxu1 %v4299_v10 }
  0x8d   :  { %3259 = vmatpush3.msk.msra.mxu0 %vm157_vm1, %v142_v4  ;;  %3260 = vmatprep.mubr.msk.f32.mxu0 %vm150_vm2, %v148_v6 }
  0x8e   :  { %3261 = vmatmul.mubr.msk.f32.vlgmr.msra.gmra.mrb[0].mxu0 %vm150_vm2, %v149_v9  ;;  %3565 = vmatprep.subr.bf16.mxu0 %v4088_v0 }
  0x8f   :  { %3567 = vmatpush3.bf16.msra.mxu0 %v4281_v5  ;;  %3282 = vmatprep.mubr.msk.f32.mxu0 %vm4089_vm0, %v4090_v1 }
  0x90   :  { %3568 = vmatprep.subr.bf16.mxu0 %v4088_v0  ;;  %3571 = vmatprep.subr.bf16.mxu1 %v4088_v0 }
  0x91   :  { %3272 = vmatmul.mubr.f32.vlgmr.msra.gmra.mrb[0].mxu1 %v4090_v1 }
  0x92   :  { %3573 = vmatpush3.bf16.msra.mxu1 %v4281_v5  ;;  %3293 = vmatprep.mubr.msk.f32.mxu1 %vm4089_vm0, %v4090_v1 }
  0x93   :  { %3570 = vmatpush3.bf16.msra.mxu0 %v4299_v10  ;;  %3574 = vmatprep.subr.bf16.mxu1 %v4088_v0 }
  0x94   :  { %3577 = vmatprep.subr.bf16.mxu0 %v4088_v0 }
  0x96   :  { %3576 = vmatpush3.bf16.msra.mxu1 %v4299_v10 }
  0x97   :  { %3583 = vmatprep.subr.bf16.mxu1 %v4088_v0 }
 0x161   :  { %v4319_v11 = vpop.f32.mrb[0].mxu0 }
 0x162   :  { %v4321_v12 = vpop.f32.mrb[1].mxu0 }
 0x164   :  { %v306_v14 = vpop.f32.mrb[0].mxu1 }
 0x165   :  { %v310_v15 = vadd.f32 %v306_v14, %v4321_v12  ;;  %v3273_v16 = vpop.f32.mrb[1].mxu1 }
 0x167   :  { %v317_v17 = vadd.f32 %v4326_v13, %v310_v15 }
 0x169   :  { %3733 = vtanh.f32 %v317_v17  ;;  %v3066_v19 = vmul.f32 -1.442695, %v317_v17 }
 0x16b   :  { %3735 = vpow2.f32 %v3066_v19 }
 0x173   :  { %v3734_v18 = vpop.eup %3733 }
 0x174   :  { %327 = vrot.lane.b32.xlu0 %v3734_v18, %s4091_s24 }
 0x175   :  { %v3736_v20 = vpop.eup %3735 }
 0x176   :  { %v321_v21 = vadd.f32 1.0, %v3736_v20 }
 0x178   :  { %3737 = vrcp.f32 %v321_v21 }
 0x182   :  { %v3738_v22 = vpop.eup %3737 }
 0x183   :  { %v325_v25 = vmul.f32 0.0, %v3738_v22 }
 0x1e6   :  { %v328_v23 = vpop.permute.xlu0 %327 }
 0x1e7   :  { %v330_v24 = vmul.f32 %v3738_v22, %v328_v23 }
 0x1e9   :  { %332 = vrot.lane.b32.xlu0 %v330_v24, %s4092_s3 }
 0x25b   :  { %v333_v26 = vpop.permute.xlu0 %332 }
 0x25c   :  { %v335_v27 = vadd.f32 %v333_v26, %v325_v25 }
 0x25e   :  { %3739 = vtanh.f32 %v335_v27  ;;  %v433_v44 = vrot.slane %v335_v27, 6 }
 0x268   :  { %v3740_v28 = vpop.eup %3739 }
 0x269   :  { %338 = vrot.lane.b32.xlu1 %v3740_v28, %s4091_s24 }
 0x2db   :  { %v339_v29 = vpop.permute.xlu1 %338 }
 0x2dc   :  { %v341_v30 = vmul.f32 %v3738_v22, %v339_v29 }
 0x2de   :  { %343 = vrot.lane.b32.xlu1 %v341_v30, %s4092_s3 }
 0x350   :  { %v344_v31 = vpop.permute.xlu1 %343 }
 0x351   :  { %347 = vst.msk [vmem:[#allocation2] sm:$0x3] %vm346_vm3, %v344_v31  ;;  %3283 = vmatmul.mubr.msk.f32.vlgmr.msra.gmra.mrb[2].mxu0 %vm236_vm4, %v344_v31 }
 0x352   :  { %3579 = vmatpush3.bf16.msra.mxu0 %v4281_v5  ;;  %3304 = vmatprep.mubr.msk.f32.mxu0 %vm4089_vm0, %v4090_v1 }
 0x353   :  { %3580 = vmatprep.subr.bf16.mxu0 %v4088_v0 }
 0x356   :  { %3582 = vmatpush3.bf16.msra.mxu0 %v4299_v10 }
 0x357   :  { %3589 = vmatprep.subr.bf16.mxu0 %v4088_v0 }
 0x424   :  { %v416_v32 = vpop.f32.mrb[2].mxu0 }
 0x425   :  { %v421_v33 = vrot.slane %v416_v32, 6  ;;  %v3284_v34 = vpop.f32.mrb[3].mxu0 }
 0x427   :  { %v423_v35 = vadd.f32 %v421_v33, %v4321_v12 }
 0x429   :  { %v424_v36 = vadd.f32 %v4326_v13, %v423_v35 }
 0x42b   :  { %3741 = vtanh.f32 %v424_v36  ;;  %v3068_v38 = vmul.f32 -1.442695, %v424_v36 }
 0x42d   :  { %3743 = vpow2.f32 %v3068_v38 }
 0x435   :  { %v3742_v37 = vpop.eup %3741 }
 0x436   :  { %437 = vrot.lane.b32.xlu0 %v3742_v37, %s4091_s24 }
 0x437   :  { %v3744_v39 = vpop.eup %3743 }
 0x438   :  { %v428_v40 = vadd.f32 1.0, %v3744_v39 }
 0x43a   :  { %3745 = vrcp.f32 %v428_v40 }
 0x444   :  { %v3746_v41 = vpop.eup %3745 }
 0x445   :  { %v435_v45 = vmul.f32 %v3746_v41, %v433_v44 }
 0x4a8   :  { %v438_v42 = vpop.permute.xlu0 %437 }
 0x4a9   :  { %v440_v43 = vmul.f32 %v3746_v41, %v438_v42 }
 0x4ab   :  { %442 = vrot.lane.b32.xlu1 %v440_v43, %s4092_s3 }
 0x51d   :  { %v443_v46 = vpop.permute.xlu1 %442 }
 0x51e   :  { %v445_v47 = vadd.f32 %v443_v46, %v435_v45 }
 0x520   :  { %3747 = vtanh.f32 %v445_v47  ;;  %v546_v3 = vrot.slane %v445_v47, 6 }
 0x52a   :  { %v3748_v48 = vpop.eup %3747 }
 0x52b   :  { %448 = vrot.lane.b32.xlu0 %v3748_v48, %s4091_s24 }
 0x59d   :  { %v449_v49 = vpop.permute.xlu0 %448 }
 0x59e   :  { %v4347_v50 = vmul.f32 %v3746_v41, %v449_v49 }
 0x5a0   :  { %v458_v51 = vrot.slane %v4347_v50, 2 }
 0x5a2   :  { %459 = vrot.lane.b32.xlu1 %v458_v51, %s4092_s3 }
 0x614   :  { %v460_v52 = vpop.permute.xlu1 %459 }
 0x615   :  { %3294 = vmatmul.mubr.msk.f32.vlgmr.msra.gmra.mrb[2].mxu1 %vm236_vm4, %v460_v52 }
 0x616   :  { %3585 = vmatpush3.bf16.msra.mxu1 %v4281_v5  ;;  %3315 = vmatprep.mubr.msk.f32.mxu1 %vm4089_vm0, %v4090_v1 }
 0x617   :  { %3586 = vmatprep.subr.bf16.mxu1 %v4088_v0 }
 0x61a   :  { %3588 = vmatpush3.bf16.msra.mxu1 %v4299_v10 }
 0x61b   :  { %3595 = vmatprep.subr.bf16.mxu1 %v4088_v0 }
 0x6e8   :  { %v529_v53 = vpop.f32.mrb[2].mxu1 }
 0x6e9   :  { %v534_v54 = vrot.slane %v529_v53, 4  ;;  %v3295_v55 = vpop.f32.mrb[3].mxu1 }
 0x6eb   :  { %v536_v56 = vadd.f32 %v534_v54, %v4321_v12 }
 0x6ed   :  { %v537_v57 = vadd.f32 %v4326_v13, %v536_v56 }
 0x6ef   :  { %3749 = vtanh.f32 %v537_v57  ;;  %v3070_v59 = vmul.f32 -1.442695, %v537_v57 }
 0x6f1   :  { %3751 = vpow2.f32 %v3070_v59 }
 0x6f9   :  { %v3750_v58 = vpop.eup %3749 }
 0x6fa   :  { %550 = vrot.lane.b32.xlu0 %v3750_v58, %s4091_s24 }
 0x6fb   :  { %v3752_v60 = vpop.eup %3751 }
 0x6fc   :  { %v541_v61 = vadd.f32 1.0, %v3752_v60 }
 0x6fe   :  { %3753 = vrcp.f32 %v541_v61 }
 0x708   :  { %v3754_v62 = vpop.eup %3753 }
 0x709   :  { %v548_v4 = vmul.f32 %v3754_v62, %v546_v3 }
 0x76c   :  { %v551_v63 = vpop.permute.xlu0 %550 }
 0x76d   :  { %v553_v2 = vmul.f32 %v3754_v62, %v551_v63 }
 0x76f   :  { %555 = vrot.lane.b32.xlu1 %v553_v2, %s4092_s3 }
 0x7e1   :  { %v556_v6 = vpop.permute.xlu1 %555 }
 0x7e2   :  { %v558_v7 = vadd.f32 %v556_v6, %v548_v4 }
 0x7e4   :  { %3755 = vtanh.f32 %v558_v7  ;;  %v659_v29 = vrot.slane %v558_v7, 6 }
 0x7ee   :  { %v3756_v8 = vpop.eup %3755 }
 0x7ef   :  { %561 = vrot.lane.b32.xlu0 %v3756_v8, %s4091_s24 }
 0x861   :  { %v562_v9 = vpop.permute.xlu0 %561 }
 0x862   :  { %v4363_v14 = vmul.f32 %v3754_v62, %v562_v9 }
 0x864   :  { %v571_v15 = vrot.slane %v4363_v14, 4 }
 0x866   :  { %572 = vrot.lane.b32.xlu1 %v571_v15, %s4092_s3 }
 0x8d8   :  { %v573_v16 = vpop.permute.xlu1 %572 }
 0x8d9   :  { %3305 = vmatmul.mubr.msk.f32.vlgmr.msra.gmra.mrb[4].mxu0 %vm236_vm4, %v573_v16 }
 0x8da   :  { %3591 = vmatpush3.bf16.msra.mxu0 %v4281_v5  ;;  %3326 = vmatprep.mubr.msk.f32.mxu0 %vm4089_vm0, %v4090_v1 }
 0x8db   :  { %3592 = vmatprep.subr.bf16.mxu0 %v4088_v0 }
 0x8de   :  { %3594 = vmatpush3.bf16.msra.mxu0 %v4299_v10 }
 0x8df   :  { %3601 = vmatprep.subr.bf16.mxu0 %v4088_v0 }
 0x9ac   :  { %v642_v17 = vpop.f32.mrb[4].mxu0 }
 0x9ad   :  { %v647_v18 = vrot.slane %v642_v17, 2  ;;  %v3306_v19 = vpop.f32.mrb[5].mxu0 }
 0x9af   :  { %v649_v20 = vadd.f32 %v647_v18, %v4321_v12 }
 0x9b1   :  { %v650_v21 = vadd.f32 %v4326_v13, %v649_v20 }
 0x9b3   :  { %3757 = vtanh.f32 %v650_v21  ;;  %v3072_v23 = vmul.f32 -1.442695, %v650_v21 }
 0x9b5   :  { %3759 = vpow2.f32 %v3072_v23 }
 0x9bd   :  { %v3758_v22 = vpop.eup %3757 }
 0x9be   :  { %663 = vrot.lane.b32.xlu0 %v3758_v22, %s4091_s24 }
 0x9bf   :  { %v3760_v24 = vpop.eup %3759 }
 0x9c0   :  { %v654_v25 = vadd.f32 1.0, %v3760_v24 }
 0x9c2   :  { %3761 = vrcp.f32 %v654_v25 }
 0x9cc   :  { %v3762_v26 = vpop.eup %3761 }
 0x9cd   :  { %v661_v30 = vmul.f32 %v3762_v26, %v659_v29 }
 0xa30   :  { %v664_v27 = vpop.permute.xlu0 %663 }
 0xa31   :  { %v666_v28 = vmul.f32 %v3762_v26, %v664_v27 }
 0xa33   :  { %668 = vrot.lane.b32.xlu1 %v666_v28, %s4092_s3 }
 0xaa5   :  { %v669_v31 = vpop.permute.xlu1 %668 }
 0xaa6   :  { %v671_v12 = vadd.f32 %v669_v31, %v661_v30 }
 0xaa8   :  { %3763 = vtanh.f32 %v671_v12  ;;  %v769_v48 = vrot.slane %v671_v12, 6 }
 0xab2   :  { %v3764_v32 = vpop.eup %3763 }
 0xab3   :  { %674 = vrot.lane.b32.xlu0 %v3764_v32, %s4091_s24 }
 0xb25   :  { %v675_v33 = vpop.permute.xlu0 %674 }
 0xb26   :  { %v4379_v34 = vmul.f32 %v3762_v26, %v675_v33 }
 0xb28   :  { %v684_v35 = vrot.slane %v4379_v34, 6 }
 0xb2a   :  { %685 = vrot.lane.b32.xlu1 %v684_v35, %s4092_s3 }
 0xb9c   :  { %v686_v36 = vpop.permute.xlu1 %685 }
 0xb9d   :  { %3316 = vmatmul.mubr.msk.f32.vlgmr.msra.gmra.mrb[4].mxu1 %vm236_vm4, %v686_v36 }
 0xb9e   :  { %3597 = vmatpush3.bf16.msra.mxu1 %v4281_v5  ;;  %3337 = vmatprep.mubr.msk.f32.mxu1 %vm4089_vm0, %v4090_v1 }
 0xb9f   :  { %3598 = vmatprep.subr.bf16.mxu1 %v4088_v0 }
 0xba2   :  { %3600 = vmatpush3.bf16.msra.mxu1 %v4299_v10 }
 0xc70   :  { %v755_v37 = vpop.f32.mrb[4].mxu1 }
 0xc71   :  { %v759_v38 = vadd.f32 %v4319_v11, %v755_v37  ;;  %v3317_v39 = vpop.f32.mrb[5].mxu1 }
 0xc73   :  { %v760_v40 = vadd.f32 %v4326_v13, %v759_v38 }
 0xc75   :  { %3765 = vtanh.f32 %v760_v40  ;;  %v3074_v42 = vmul.f32 -1.442695, %v760_v40 }
 0xc77   :  { %3767 = vpow2.f32 %v3074_v42 }
 0xc7f   :  { %v3766_v41 = vpop.eup %3765 }
 0xc80   :  { %773 = vrot.lane.b32.xlu0 %v3766_v41, %s4091_s24 }
 0xc81   :  { %v3768_v43 = vpop.eup %3767 }
 0xc82   :  { %v764_v44 = vadd.f32 1.0, %v3768_v43 }
 0xc84   :  { %3769 = vrcp.f32 %v764_v44 }
 0xc8e   :  { %v3770_v45 = vpop.eup %3769 }
 0xc8f   :  { %v771_v49 = vmul.f32 %v3770_v45, %v769_v48 }
 0xcf2   :  { %v774_v46 = vpop.permute.xlu0 %773 }
 0xcf3   :  { %v776_v47 = vmul.f32 %v3770_v45, %v774_v46 }
 0xcf5   :  { %778 = vrot.lane.b32.xlu1 %v776_v47, %s4092_s3 }
 0xd67   :  { %v779_v51 = vpop.permute.xlu1 %778 }
 0xd68   :  { %v781_v52 = vadd.f32 %v779_v51, %v771_v49 }
 0xd6a   :  { %3771 = vtanh.f32 %v781_v52  ;;  %v878_v6 = vrot.slane %v781_v52, 6 }
 0xd74   :  { %v3772_v53 = vpop.eup %3771 }
 0xd75   :  { %784 = vrot.lane.b32.xlu0 %v3772_v53, %s4091_s24 }
 0xde7   :  { %v785_v54 = vpop.permute.xlu0 %784 }
 0xde8   :  { %v787_v55 = vmul.f32 %v3770_v45, %v785_v54 }
 0xdea   :  { %789 = vrot.lane.b32.xlu1 %v787_v55, %s4092_s3 }
 0xe5c   :  { %v790_v56 = vpop.permute.xlu1 %789 }
 0xe5d   :  { %792 = vst.msk [vmem:[#allocation2 + $0x8] sm:$0x3] %vm346_vm3, %v790_v56  ;;  %3327 = vmatmul.mubr.msk.f32.vlgmr.msra.gmra.mrb[6].mxu0 %vm236_vm4, %v790_v56 }
 0xe5e   :  { %3603 = vmatpush3.bf16.msra.mxu0 %v4281_v5  ;;  %3348 = vmatprep.mubr.msk.f32.mxu0 %vm4089_vm0, %v4090_v1 }
 0xe5f   :  { %3604 = vmatprep.subr.bf16.mxu0 %v4088_v0 }
 0xe62   :  { %3606 = vmatpush3.bf16.msra.mxu0 %v4299_v10 }
 0xe63   :  { %3615 = vmatprep.subr.bf16.mxu0 %v4088_v0 }
 0xf30   :  { %v861_v57 = vpop.f32.mrb[6].mxu0 }
 0xf31   :  { %v866_v58 = vrot.slane %v861_v57, 6  ;;  %v3328_v59 = vpop.f32.mrb[7].mxu0 }
 0xf32   :  { %v1127_v59 = vld [vmem:[%s4764_s4 + $0x8] sm:$0xff] }
 0xf33   :  { %v868_v60 = vadd.f32 %v4319_v11, %v866_v58  ;;  %v1126_v58 = vld [vmem:[%s4764_s4] sm:$0xff] }
 0xf35   :  { %v869_v61 = vadd.f32 %v4326_v13, %v868_v60  ;;  %v3607_v60 = vpack.c.bf16 %v1127_v59, %v1126_v58 }
 0xf37   :  { %3773 = vtanh.f32 %v869_v61  ;;  %v3076_v5 = vmul.f32 -1.442695, %v869_v61  ;;  %v1130_v61 = vld [vmem:[%s4765_s5] sm:$0xff]  ;;  %3608 = vmatprep.subr.bf16.mxu1 %v3607_v60 }
 0xf39   :  { %3775 = vpow2.f32 %v3076_v5  ;;  %v1128_v5 = vld [vmem:[%s4764_s4 + $0x10] sm:$0xff] }
 0xf41   :  { %v3774_v62 = vpop.eup %3773 }
 0xf42   :  { %882 = vrot.lane.b32.xlu0 %v3774_v62, %s4091_s24 }
 0xf43   :  { %v3776_v63 = vpop.eup %3775 }
 0xf44   :  { %v873_v2 = vadd.f32 1.0, %v3776_v63  ;;  %v1129_v63 = vld [vmem:[%s4764_s4 + $0x18] sm:$0xff] }
 0xf46   :  { %3777 = vrcp.f32 %v873_v2  ;;  %v1132_v2 = vld [vmem:[%s4765_s5 + $0x10] sm:$0xff] }
 0xf50   :  { %v3778_v3 = vpop.eup %3777 }
 0xf51   :  { %v880_v7 = vmul.f32 %v3778_v3, %v878_v6 }
 0xfb4   :  { %v883_v10 = vpop.permute.xlu0 %882 }
 0xfb5   :  { %v885_v4 = vmul.f32 %v3778_v3, %v883_v10  ;;  %v1133_v10 = vld [vmem:[%s4765_s5 + $0x18] sm:$0xff] }
 0xfb7   :  { %887 = vrot.lane.b32.xlu1 %v885_v4, %s4092_s3  ;;  %v4470_v4 = vpack.c.bf16 %v1133_v10, %v1132_v2 }
0x1029   :  { %v888_v8 = vpop.permute.xlu1 %887 }
0x102a   :  { %v890_v9 = vadd.f32 %v888_v8, %v880_v7 }
0x102c   :  { %3779 = vtanh.f32 %v890_v9  ;;  %v990_v12 = vrot.slane %v890_v9, 6 }
0x1036   :  { %v3780_v15 = vpop.eup %3779 }
0x1037   :  { %893 = vrot.lane.b32.xlu0 %v3780_v15, %s4091_s24 }
0x10a9   :  { %v894_v16 = vpop.permute.xlu0 %893 }
0x10aa   :  { %v4408_v17 = vmul.f32 %v3778_v3, %v894_v16  ;;  %v3611_v3 = vpack.c.bf16 %v1129_v63, %v1128_v5 }
0x10ac   :  { %v902_v18 = vrot.slane %v4408_v17, 2 }
0x10ae   :  { %903 = vrot.lane.b32.xlu1 %v902_v18, %s4092_s3 }
0x1120   :  { %v904_v19 = vpop.permute.xlu1 %903 }
0x1121   :  { %3338 = vmatmul.mubr.msk.f32.vlgmr.msra.gmra.mrb[6].mxu1 %vm236_vm4, %v904_v19 }
0x1122   :  { %3610 = vmatpush3.bf16.msra.mxu1 %v3607_v60 }
0x1123   :  { %3612 = vmatprep.subr.bf16.mxu1 %v3611_v3 }
0x1126   :  { %3614 = vmatpush3.bf16.msra.mxu1 %v3611_v3 }
0x1127   :  { %3621 = vmatprep.subr.bf16.mxu1 %v4088_v0 }
0x11f4   :  { %v973_v20 = vpop.f32.mrb[6].mxu1 }
0x11f5   :  { %v978_v21 = vrot.slane %v973_v20, 4  ;;  %v3339_v22 = vpop.f32.mrb[7].mxu1 }
0x11f7   :  { %v980_v23 = vadd.f32 %v4319_v11, %v978_v21  ;;  %v4502_v21 = vld [vmem:[%s4766_s6] ss:$0 sm:$0xff] }
0x11f9   :  { %v981_v24 = vadd.f32 %v4326_v13, %v980_v23 }
0x11fb   :  { %3781 = vtanh.f32 %v981_v24  ;;  %v3078_v26 = vmul.f32 -1.442695, %v981_v24 }
0x11fd   :  { %3783 = vpow2.f32 %v3078_v26 }
0x1205   :  { %v3782_v25 = vpop.eup %3781 }
0x1206   :  { %994 = vrot.lane.b32.xlu0 %v3782_v25, %s4091_s24 }
0x1207   :  { %v3784_v27 = vpop.eup %3783 }
0x1208   :  { %v985_v28 = vadd.f32 1.0, %v3784_v27 }
0x120a   :  { %3785 = vrcp.f32 %v985_v28 }
0x1214   :  { %v3786_v29 = vpop.eup %3785 }
0x1215   :  { %v992_v32 = vmul.f32 %v3786_v29, %v990_v12 }
0x1278   :  { %v995_v30 = vpop.permute.xlu0 %994 }
0x1279   :  { %v997_v31 = vmul.f32 %v3786_v29, %v995_v30 }
0x127b   :  { %999 = vrot.lane.b32.xlu1 %v997_v31, %s4092_s3 }
0x12ed   :  { %v1000_v33 = vpop.permute.xlu1 %999 }
0x12ee   :  { %v1002_v35 = vadd.f32 %v1000_v33, %v992_v32 }
0x12f0   :  { %3787 = vtanh.f32 %v1002_v35 }
0x12fa   :  { %v3788_v36 = vpop.eup %3787 }
0x12fb   :  { %1005 = vrot.lane.b32.xlu0 %v3788_v36, %s4091_s24 }
0x136d   :  { %v1006_v37 = vpop.permute.xlu0 %1005 }
0x136e   :  { %v1008_v38 = vmul.f32 %v3786_v29, %v1006_v37 }
0x1370   :  { %v1014_v39 = vrot.slane %v1008_v38, 4 }
0x1372   :  { %1015 = vrot.lane.b32.xlu1 %v1014_v39, %s4092_s3 }
0x13e4   :  { %v1016_v40 = vpop.permute.xlu1 %1015 }
0x13e5   :  { %3349 = vmatmul.mubr.msk.f32.vlgmr.msra.gmra.mrb[8].mxu0 %vm236_vm4, %v1016_v40 }
0x13e6   :  { %3370 = vmatprep.mubr.msk.f32.mxu0 %vm4089_vm0, %v4090_v1 }
0x14b8   :  { %v1085_v41 = vpop.f32.mrb[8].mxu0 }
0x14b9   :  { %v1090_v42 = vrot.slane %v1085_v41, 2  ;;  %v3350_v43 = vpop.f32.mrb[9].mxu0 }
0x14bb   :  { %v1092_v44 = vadd.f32 %v4319_v11, %v1090_v42  ;;  %v1102_v11 = vrot.slane %v1002_v35, 6 }
0x14bd   :  { %v1093_v45 = vadd.f32 %v4326_v13, %v1092_v44 }
0x14bf   :  { %3789 = vtanh.f32 %v1093_v45  ;;  %v3080_v47 = vmul.f32 -1.442695, %v1093_v45 }
0x14c1   :  { %3791 = vpow2.f32 %v3080_v47 }
0x14c9   :  { %v3790_v46 = vpop.eup %3789 }
0x14ca   :  { %1106 = vrot.lane.b32.xlu0 %v3790_v46, %s4091_s24 }
0x14cb   :  { %v3792_v48 = vpop.eup %3791 }
0x14cc   :  { %v1097_v49 = vadd.f32 1.0, %v3792_v48 }
0x14ce   :  { %3793 = vrcp.f32 %v1097_v49 }
0x14d8   :  { %v3794_v51 = vpop.eup %3793 }
0x14d9   :  { %v1104_v13 = vmul.f32 %v3794_v51, %v1102_v11 }
0x153c   :  { %v1107_v52 = vpop.permute.xlu0 %1106 }
0x153d   :  { %v1109_v53 = vmul.f32 %v3794_v51, %v1107_v52 }
0x153f   :  { %1111 = vrot.lane.b32.xlu1 %v1109_v53, %s4092_s3 }
0x1543   :  { %453 = vrot.lane.b32.xlu1 %v4347_v50, %s4092_s3 }
0x1547   :  { %679 = vrot.lane.b32.xlu1 %v4379_v34, %s4092_s3 }
0x154b   :  { %1010 = vrot.lane.b32.xlu1 %v1008_v38, %s4092_s3 }
0x15b1   :  { %v1112_v54 = vpop.permute.xlu1 %1111 }
0x15b2   :  { %v4431_v55 = vadd.f32 %v1112_v54, %v1104_v13 }
0x15b4   :  { %3795 = vtanh.f32 %v4431_v55 }
0x15b5   :  { %v454_v56 = vpop.permute.xlu1 %453 }
0x15b6   :  { %457 = vst.msk [vmem:[#allocation2] sm:$0xc] %vm456_vm5, %v454_v56 }
0x15b9   :  { %v680_v57 = vpop.permute.xlu1 %679 }
0x15ba   :  { %683 = vst.msk [vmem:[#allocation2] sm:$0xc0] %vm682_vm6, %v680_v57 }
0x15bd   :  { %v1011_v50 = vpop.permute.xlu1 %1010 }
0x15be   :  { %v3796_v34 = vpop.eup %3795  ;;  %1013 = vst.msk [vmem:[#allocation2 + $0x8] sm:$0x30] %vm569_vm7, %v1011_v50 }
0x15bf   :  { %1117 = vrot.lane.b32.xlu0 %v3796_v34, %s4091_s24 }
0x15c3   :  { %566 = vrot.lane.b32.xlu0 %v4363_v14, %s4092_s3  ;;  %v1131_v14 = vld [vmem:[%s4765_s5 + $0x8] sm:$0xff] }
0x15c4   :  { %v4454_v62 = vpack.c.bf16 %v1131_v14, %v1130_v61 }
0x15c6   :  { %3617 = vmatpush3.bf16.msra.mxu0 %v4454_v62 }
0x15c7   :  { %898 = vrot.lane.b32.xlu0 %v4408_v17, %s4092_s3  ;;  %3618 = vmatprep.subr.bf16.mxu0 %v4088_v0 }
0x15ca   :  { %3620 = vmatpush3.bf16.msra.mxu0 %v4470_v4 }
0x15cb   :  { %3627 = vmatprep.subr.bf16.mxu0 %v4088_v0 }
0x15cd   :  { %3371 = vmatmul.mubr.f32.vlgmr.msra.gmra.mrb[10].mxu0 %v4090_v1 }
0x15ce   :  { %3629 = vmatpush3.bf16.msra.mxu0 %v4454_v62  ;;  %3392 = vmatprep.mubr.msk.f32.mxu0 %vm4089_vm0, %v4090_v1 }
0x15cf   :  { %3630 = vmatprep.subr.bf16.mxu0 %v4088_v0 }
0x15d2   :  { %3632 = vmatpush3.bf16.msra.mxu0 %v4470_v4 }
0x15d3   :  { %3639 = vmatprep.subr.bf16.mxu0 %v4088_v0 }
0x1631   :  { %v1118_v6 = vpop.permute.xlu0 %1117 }
0x1632   :  { %v4480_v7 = vmul.f32 %v3794_v51, %v1118_v6 }
0x1634   :  { %1122 = vrot.lane.b32.xlu0 %v4480_v7, %s4092_s3 }
0x1635   :  { %v567_v8 = vpop.permute.xlu0 %566 }
0x1636   :  { %570 = vst.msk [vmem:[#allocation2] sm:$0x30] %vm569_vm7, %v567_v8 }
0x1639   :  { %v899_v9 = vpop.permute.xlu0 %898 }
0x163a   :  { %901 = vst.msk [vmem:[#allocation2 + $0x8] sm:$0xc] %vm456_vm5, %v899_v9 }
0x163d   :  { %v1135_v15 = vld [vmem:[#allocation2] sm:$0xff] }
0x163e   :  { %3359 = vmatprep.mubr.msk.f32.mxu1 %vm236_vm4, %v1135_v15 }
0x16a0   :  { %v1284_v18 = vpop.f32.mrb[10].mxu0 }
0x16a1   :  { %v3372_v19 = vpop.f32.mrb[11].mxu0 }
0x16a6   :  { %v1123_v16 = vpop.permute.xlu0 %1122 }
0x16a7   :  { %1125 = vst.msk [vmem:[#allocation2 + $0x8] sm:$0xc0] %vm682_vm6, %v1123_v16 }
0x16ae   :  { %v1136_v17 = vld [vmem:[#allocation2 + $0x8] sm:$0xff] }
0x16af   :  { %3360 = vmatmul.mubr.msk.f32.vlgmr.msra.gmra.mrb[8].mxu1 %vm236_vm4, %v1136_v17 }
0x16b0   :  { %3623 = vmatpush3.bf16.msra.mxu1 %v4454_v62  ;;  %3381 = vmatprep.mubr.msk.f32.mxu1 %vm4089_vm0, %v4090_v1 }
0x16b1   :  { %3624 = vmatprep.subr.bf16.mxu1 %v4088_v0 }
0x16b4   :  { %3626 = vmatpush3.bf16.msra.mxu1 %v4470_v4 }
0x16b5   :  { %3633 = vmatprep.subr.bf16.mxu1 %v4088_v0 }
0x1782   :  { %v4497_v20 = vpop.f32.mrb[8].mxu1 }
0x1783   :  { %v4504_v22 = vpop.f32.mrb[9].mxu1 }
0x1784   :  { %v1288_v23 = vadd.f32 %v1284_v18, %v4504_v22 }
0x1786   :  { %v1295_v24 = vadd.f32 %v4502_v21, %v1288_v23 }
0x1788   :  { %3797 = vtanh.f32 %v1295_v24  ;;  %v3084_v26 = vmul.f32 -1.442695, %v1295_v24 }
0x178a   :  { %3799 = vpow2.f32 %v3084_v26 }
0x1792   :  { %v3798_v25 = vpop.eup %3797 }
0x1793   :  { %1305 = vrot.lane.b32.xlu1 %v3798_v25, %s4091_s24 }
0x1794   :  { %v3800_v27 = vpop.eup %3799 }
0x1795   :  { %v1299_v28 = vadd.f32 1.0, %v3800_v27 }
0x1797   :  { %3801 = vrcp.f32 %v1299_v28 }
0x17a1   :  { %v3802_v29 = vpop.eup %3801 }
0x17a2   :  { %v1303_v12 = vmul.f32 0.0, %v3802_v29 }
0x1805   :  { %v1306_v30 = vpop.permute.xlu1 %1305 }
0x1806   :  { %v1308_v31 = vmul.f32 %v3802_v29, %v1306_v30 }
0x1808   :  { %1310 = vrot.lane.b32.xlu0 %v1308_v31, %s4092_s3 }
0x187a   :  { %v1311_v32 = vpop.permute.xlu0 %1310 }
0x187b   :  { %v1313_v33 = vadd.f32 %v1311_v32, %v1303_v12 }
0x187d   :  { %3803 = vtanh.f32 %v1313_v33  ;;  %v1408_v52 = vrot.slane %v1313_v33, 6 }
0x1887   :  { %v3804_v35 = vpop.eup %3803 }
0x1888   :  { %1316 = vrot.lane.b32.xlu1 %v3804_v35, %s4091_s24 }
0x18fa   :  { %v1317_v36 = vpop.permute.xlu1 %1316 }
0x18fb   :  { %v1319_v37 = vmul.f32 %v3802_v29, %v1317_v36 }
0x18fd   :  { %1321 = vrot.lane.b32.xlu0 %v1319_v37, %s4092_s3 }
0x196f   :  { %v1322_v38 = vpop.permute.xlu0 %1321 }
0x1970   :  { %3382 = vmatmul.mubr.msk.f32.vlgmr.msra.gmra.mrb[10].mxu1 %vm236_vm4, %v1322_v38 }
0x1971   :  { %3635 = vmatpush3.bf16.msra.mxu1 %v4454_v62  ;;  %3403 = vmatprep.mubr.msk.f32.mxu1 %vm4089_vm0, %v4090_v1 }
0x1972   :  { %3636 = vmatprep.subr.bf16.mxu1 %v4088_v0 }
0x1975   :  { %3638 = vmatpush3.bf16.msra.mxu1 %v4470_v4 }
0x1976   :  { %3645 = vmatprep.subr.bf16.mxu1 %v4088_v0 }
0x1a43   :  { %v1391_v39 = vpop.f32.mrb[10].mxu1 }
0x1a44   :  { %v1396_v40 = vrot.slane %v1391_v39, 6  ;;  %v3383_v41 = vpop.f32.mrb[11].mxu1 }
0x1a46   :  { %v1398_v42 = vadd.f32 %v1396_v40, %v4504_v22 }
0x1a48   :  { %v1399_v43 = vadd.f32 %v4502_v21, %v1398_v42 }
0x1a4a   :  { %3805 = vtanh.f32 %v1399_v43  ;;  %v3086_v45 = vmul.f32 -1.442695, %v1399_v43 }
0x1a4c   :  { %3807 = vpow2.f32 %v3086_v45 }
0x1a54   :  { %v3806_v44 = vpop.eup %3805 }
0x1a55   :  { %1412 = vrot.lane.b32.xlu1 %v3806_v44, %s4091_s24 }
0x1a56   :  { %v3808_v46 = vpop.eup %3807 }
0x1a57   :  { %v1403_v47 = vadd.f32 1.0, %v3808_v46 }
0x1a59   :  { %3809 = vrcp.f32 %v1403_v47 }
0x1a63   :  { %v3810_v48 = vpop.eup %3809 }
0x1a64   :  { %v1410_v53 = vmul.f32 %v3810_v48, %v1408_v52 }
0x1ac7   :  { %v1413_v49 = vpop.permute.xlu1 %1412 }
0x1ac8   :  { %v1415_v51 = vmul.f32 %v3810_v48, %v1413_v49 }
0x1aca   :  { %1417 = vrot.lane.b32.xlu0 %v1415_v51, %s4092_s3 }
0x1b3c   :  { %v1418_v11 = vpop.permute.xlu0 %1417 }
0x1b3d   :  { %v1420_v13 = vadd.f32 %v1418_v11, %v1410_v53 }
0x1b3f   :  { %3811 = vtanh.f32 %v1420_v13  ;;  %v1516_v9 = vrot.slane %v1420_v13, 6 }
0x1b49   :  { %v3812_v54 = vpop.eup %3811 }
0x1b4a   :  { %1423 = vrot.lane.b32.xlu1 %v3812_v54, %s4091_s24 }
0x1bbc   :  { %v1424_v56 = vpop.permute.xlu1 %1423 }
0x1bbd   :  { %v1426_v57 = vmul.f32 %v3810_v48, %v1424_v56 }
0x1bbf   :  { %v1428_v50 = vrot.slane %v1426_v57, 2 }
0x1bc1   :  { %1429 = vrot.lane.b32.xlu0 %v1428_v50, %s4092_s3 }
0x1c33   :  { %v1430_v34 = vpop.permute.xlu0 %1429 }
0x1c34   :  { %3393 = vmatmul.mubr.msk.f32.vlgmr.msra.gmra.mrb[12].mxu0 %vm236_vm4, %v1430_v34 }
0x1c35   :  { %3641 = vmatpush3.bf16.msra.mxu0 %v4454_v62  ;;  %3414 = vmatprep.mubr.msk.f32.mxu0 %vm4089_vm0, %v4090_v1 }
0x1c36   :  { %3642 = vmatprep.subr.bf16.mxu0 %v4088_v0 }
0x1c39   :  { %3644 = vmatpush3.bf16.msra.mxu0 %v4470_v4 }
0x1c3a   :  { %3651 = vmatprep.subr.bf16.mxu0 %v4088_v0 }
0x1d07   :  { %v1499_v58 = vpop.f32.mrb[12].mxu0 }
0x1d08   :  { %v1504_v59 = vrot.slane %v1499_v58, 4  ;;  %v3394_v60 = vpop.f32.mrb[13].mxu0 }
0x1d0a   :  { %v1506_v61 = vadd.f32 %v1504_v59, %v4504_v22 }
0x1d0c   :  { %v1507_v14 = vadd.f32 %v4502_v21, %v1506_v61 }
0x1d0e   :  { %3813 = vtanh.f32 %v1507_v14  ;;  %v3088_v63 = vmul.f32 -1.442695, %v1507_v14 }
0x1d10   :  { %3815 = vpow2.f32 %v3088_v63 }
0x1d18   :  { %v3814_v5 = vpop.eup %3813 }
0x1d19   :  { %1520 = vrot.lane.b32.xlu1 %v3814_v5, %s4091_s24 }
0x1d1a   :  { %v3816_v2 = vpop.eup %3815 }
0x1d1b   :  { %v1511_v3 = vadd.f32 1.0, %v3816_v2 }
0x1d1d   :  { %3817 = vrcp.f32 %v1511_v3 }
0x1d27   :  { %v3818_v10 = vpop.eup %3817 }
0x1d28   :  { %v1518_v15 = vmul.f32 %v3818_v10, %v1516_v9 }
0x1d8b   :  { %v1521_v6 = vpop.permute.xlu1 %1520 }
0x1d8c   :  { %v1523_v8 = vmul.f32 %v3818_v10, %v1521_v6 }
0x1d8e   :  { %1525 = vrot.lane.b32.xlu0 %v1523_v8, %s4092_s3 }
0x1e00   :  { %v1526_v16 = vpop.permute.xlu0 %1525 }
0x1e01   :  { %v1528_v17 = vadd.f32 %v1526_v16, %v1518_v15 }
0x1e03   :  { %3819 = vtanh.f32 %v1528_v17  ;;  %v1624_v38 = vrot.slane %v1528_v17, 6 }
0x1e0d   :  { %v3820_v18 = vpop.eup %3819 }
0x1e0e   :  { %1531 = vrot.lane.b32.xlu1 %v3820_v18, %s4091_s24 }
0x1e80   :  { %v1532_v19 = vpop.permute.xlu1 %1531 }
0x1e81   :  { %v1534_v23 = vmul.f32 %v3818_v10, %v1532_v19 }
0x1e83   :  { %v1536_v24 = vrot.slane %v1534_v23, 4 }
0x1e85   :  { %1537 = vrot.lane.b32.xlu0 %v1536_v24, %s4092_s3 }
0x1ef7   :  { %v1538_v25 = vpop.permute.xlu0 %1537 }
0x1ef8   :  { %3404 = vmatmul.mubr.msk.f32.vlgmr.msra.gmra.mrb[12].mxu1 %vm236_vm4, %v1538_v25 }
0x1ef9   :  { %3647 = vmatpush3.bf16.msra.mxu1 %v4454_v62  ;;  %3425 = vmatprep.mubr.msk.f32.mxu1 %vm4089_vm0, %v4090_v1 }
0x1efa   :  { %3648 = vmatprep.subr.bf16.mxu1 %v4088_v0 }
0x1efd   :  { %3650 = vmatpush3.bf16.msra.mxu1 %v4470_v4 }
0x1efe   :  { %3657 = vmatprep.subr.bf16.mxu1 %v4088_v0 }
0x1fcb   :  { %v1607_v26 = vpop.f32.mrb[12].mxu1 }
0x1fcc   :  { %v1612_v27 = vrot.slane %v1607_v26, 2  ;;  %v3405_v28 = vpop.f32.mrb[13].mxu1 }
0x1fce   :  { %v1614_v29 = vadd.f32 %v1612_v27, %v4504_v22 }
0x1fd0   :  { %v1615_v30 = vadd.f32 %v4502_v21, %v1614_v29 }
0x1fd2   :  { %3821 = vtanh.f32 %v1615_v30  ;;  %v3090_v12 = vmul.f32 -1.442695, %v1615_v30 }
0x1fd4   :  { %3823 = vpow2.f32 %v3090_v12 }
0x1fdc   :  { %v3822_v31 = vpop.eup %3821 }
0x1fdd   :  { %1628 = vrot.lane.b32.xlu1 %v3822_v31, %s4091_s24 }
0x1fde   :  { %v3824_v32 = vpop.eup %3823 }
0x1fdf   :  { %v1619_v33 = vadd.f32 1.0, %v3824_v32 }
0x1fe1   :  { %3825 = vrcp.f32 %v1619_v33 }
0x1feb   :  { %v3826_v35 = vpop.eup %3825 }
0x1fec   :  { %v1626_v39 = vmul.f32 %v3826_v35, %v1624_v38 }
0x204f   :  { %v1629_v36 = vpop.permute.xlu1 %1628 }
0x2050   :  { %v1631_v37 = vmul.f32 %v3826_v35, %v1629_v36 }
0x2052   :  { %1633 = vrot.lane.b32.xlu0 %v1631_v37, %s4092_s3 }
0x20c4   :  { %v1634_v40 = vpop.permute.xlu0 %1633 }
0x20c5   :  { %v1636_v22 = vadd.f32 %v1634_v40, %v1626_v39 }
0x20c7   :  { %3827 = vtanh.f32 %v1636_v22  ;;  %v1729_v57 = vrot.slane %v1636_v22, 6 }
0x20d1   :  { %v3828_v41 = vpop.eup %3827 }
0x20d2   :  { %1639 = vrot.lane.b32.xlu1 %v3828_v41, %s4091_s24 }
0x2144   :  { %v1640_v42 = vpop.permute.xlu1 %1639 }
0x2145   :  { %v1642_v43 = vmul.f32 %v3826_v35, %v1640_v42 }
0x2147   :  { %v1644_v44 = vrot.slane %v1642_v43, 6 }
0x2149   :  { %1645 = vrot.lane.b32.xlu0 %v1644_v44, %s4092_s3 }
0x21bb   :  { %v1646_v45 = vpop.permute.xlu0 %1645 }
0x21bc   :  { %3415 = vmatmul.mubr.msk.f32.vlgmr.msra.gmra.mrb[14].mxu0 %vm236_vm4, %v1646_v45 }
0x21bd   :  { %3653 = vmatpush3.bf16.msra.mxu0 %v4454_v62  ;;  %3436 = vmatprep.mubr.msk.f32.mxu0 %vm4089_vm0, %v4090_v1 }
0x21be   :  { %3654 = vmatprep.subr.bf16.mxu0 %v4088_v0 }
0x21c1   :  { %3656 = vmatpush3.bf16.msra.mxu0 %v4470_v4 }
0x21c2   :  { %3663 = vmatprep.subr.bf16.mxu0 %v4088_v0 }
0x228f   :  { %v1715_v46 = vpop.f32.mrb[14].mxu0 }
0x2290   :  { %v1719_v47 = vadd.f32 %v4497_v20, %v1715_v46  ;;  %v3416_v48 = vpop.f32.mrb[15].mxu0 }
0x2292   :  { %v1720_v49 = vadd.f32 %v4502_v21, %v1719_v47 }
0x2294   :  { %3829 = vtanh.f32 %v1720_v49  ;;  %v3092_v52 = vmul.f32 -1.442695, %v1720_v49 }
0x2296   :  { %3831 = vpow2.f32 %v3092_v52 }
0x229e   :  { %v3830_v51 = vpop.eup %3829 }
0x229f   :  { %1733 = vrot.lane.b32.xlu1 %v3830_v51, %s4091_s24 }
0x22a0   :  { %v3832_v53 = vpop.eup %3831 }
0x22a1   :  { %v1724_v11 = vadd.f32 1.0, %v3832_v53 }
0x22a3   :  { %3833 = vrcp.f32 %v1724_v11 }
0x22ad   :  { %v3834_v13 = vpop.eup %3833 }
0x22ae   :  { %v1731_v50 = vmul.f32 %v3834_v13, %v1729_v57 }
0x2311   :  { %v1734_v54 = vpop.permute.xlu1 %1733 }
0x2312   :  { %v1736_v56 = vmul.f32 %v3834_v13, %v1734_v54 }
0x2314   :  { %1738 = vrot.lane.b32.xlu0 %v1736_v56, %s4092_s3 }
0x2386   :  { %v1739_v34 = vpop.permute.xlu0 %1738 }
0x2387   :  { %v1741_v58 = vadd.f32 %v1739_v34, %v1731_v50 }
0x2389   :  { %3835 = vtanh.f32 %v1741_v58  ;;  %v1836_v17 = vrot.slane %v1741_v58, 6 }
0x2393   :  { %v3836_v59 = vpop.eup %3835 }
0x2394   :  { %1744 = vrot.lane.b32.xlu1 %v3836_v59, %s4091_s24  ;;  %v2161_v59 = vld [vmem:[#allocation6] sm:$0xff] }
0x2406   :  { %v1745_v60 = vpop.permute.xlu1 %1744 }
0x2407   :  { %v1747_v61 = vmul.f32 %v3834_v13, %v1745_v60  ;;  %v2162_v60 = vld [vmem:[#allocation6 + $0x8] sm:$0xff] }
0x2409   :  { %1749 = vrot.lane.b32.xlu0 %v1747_v61, %s4092_s3  ;;  %v4593_v61 = vpack.c.bf16 %v2162_v60, %v2161_v59 }
0x247b   :  { %v1750_v14 = vpop.permute.xlu0 %1749 }
0x247c   :  { %3426 = vmatmul.mubr.msk.f32.vlgmr.msra.gmra.mrb[14].mxu1 %vm236_vm4, %v1750_v14  ;;  %v2163_v14 = vld [vmem:[#allocation6 + $0x10] sm:$0xff] }
0x247d   :  { %3659 = vmatpush3.bf16.msra.mxu1 %v4454_v62  ;;  %3447 = vmatprep.mubr.msk.f32.mxu1 %vm4089_vm0, %v4090_v1 }
0x247e   :  { %3660 = vmatprep.subr.bf16.mxu1 %v4088_v0 }
0x2481   :  { %3662 = vmatpush3.bf16.msra.mxu1 %v4470_v4 }
0x2482   :  { %3669 = vmatprep.subr.bf16.mxu1 %v4088_v0 }
0x254f   :  { %v1819_v5 = vpop.f32.mrb[14].mxu1 }
0x2550   :  { %v1824_v63 = vrot.slane %v1819_v5, 6  ;;  %v3427_v2 = vpop.f32.mrb[15].mxu1  ;;  %v2164_v5 = vld [vmem:[#allocation6 + $0x18] sm:$0xff] }
0x2551   :  { %v4597_v2 = vpack.c.bf16 %v2164_v5, %v2163_v14 }
0x2552   :  { %v1826_v3 = vadd.f32 %v4497_v20, %v1824_v63 }
0x2554   :  { %v1827_v10 = vadd.f32 %v4502_v21, %v1826_v3 }
0x2556   :  { %3837 = vtanh.f32 %v1827_v10  ;;  %v3094_v62 = vmul.f32 -1.442695, %v1827_v10  ;;  %v2071_v10 = vld [vmem:[%s4773_s13] sm:$0xff] }
0x2558   :  { %3839 = vpow2.f32 %v3094_v62  ;;  %v2073_v62 = vld [vmem:[%s4773_s13 + $0x10] sm:$0xff] }
0x2560   :  { %v3838_v6 = vpop.eup %3837 }
0x2561   :  { %1840 = vrot.lane.b32.xlu1 %v3838_v6, %s4091_s24  ;;  %v2072_v6 = vld [vmem:[%s4773_s13 + $0x8] sm:$0xff] }
0x2562   :  { %v3840_v8 = vpop.eup %3839 }
0x2563   :  { %v1831_v9 = vadd.f32 1.0, %v3840_v8  ;;  %v3664_v8 = vpack.c.bf16 %v2072_v6, %v2071_v10 }
0x2565   :  { %3841 = vrcp.f32 %v1831_v9  ;;  %v2074_v9 = vld [vmem:[%s4773_s13 + $0x18] sm:$0xff] }
0x256f   :  { %v3842_v15 = vpop.eup %3841 }
0x2570   :  { %v1838_v18 = vmul.f32 %v3842_v15, %v1836_v17 }
0x25d3   :  { %v1841_v4 = vpop.permute.xlu1 %1840 }
0x25d4   :  { %v1843_v16 = vmul.f32 %v3842_v15, %v1841_v4 }
0x25d6   :  { %1845 = vrot.lane.b32.xlu0 %v1843_v16, %s4092_s3  ;;  %v2180_v16 = vrot.slane %v4480_v7, 6 }
0x2648   :  { %v1846_v19 = vpop.permute.xlu0 %1845 }
0x2649   :  { %v1848_v23 = vadd.f32 %v1846_v19, %v1838_v18 }
0x264b   :  { %3843 = vtanh.f32 %v1848_v23  ;;  %v1944_v22 = vrot.slane %v1848_v23, 6 }
0x2655   :  { %v3844_v24 = vpop.eup %3843 }
0x2656   :  { %1851 = vrot.lane.b32.xlu1 %v3844_v24, %s4091_s24  ;;  %v4625_v24 = vld [vmem:[#allocation3] sm:$0xf] }
0x26c8   :  { %v1852_v25 = vpop.permute.xlu1 %1851 }
0x26c9   :  { %v1854_v26 = vmul.f32 %v3842_v15, %v1852_v25  ;;  %v3667_v15 = vpack.c.bf16 %v2074_v9, %v2073_v62 }
0x26cb   :  { %v1856_v27 = vrot.slane %v1854_v26, 2 }
0x26cd   :  { %1857 = vrot.lane.b32.xlu0 %v1856_v27, %s4092_s3  ;;  %v2170_v27 = vld [vmem:[#allocation9] sm:$0xff] }
0x273f   :  { %v1858_v28 = vpop.permute.xlu0 %1857 }
0x2740   :  { %3437 = vmatmul.mubr.msk.f32.vlgmr.msra.gmra.mrb[16].mxu0 %vm236_vm4, %v1858_v28  ;;  %v2171_v28 = vld [vmem:[#allocation9 + $0x8] sm:$0xff] }
0x2741   :  { %3458 = vmatprep.mubr.msk.f32.mxu0 %vm4089_vm0, %v4090_v1  ;;  %3665 = vmatpush3.bf16.msra.mxu0 %v3664_v8 }
0x2742   :  { %3666 = vmatprep.subr.bf16.mxu0 %v4088_v0 }
0x2745   :  { %3668 = vmatpush3.bf16.msra.mxu0 %v3667_v15 }
0x2746   :  { %3472 = vmatprep.subr.mxu0 %v4090_v1 }
0x2813   :  { %v1927_v29 = vpop.f32.mrb[16].mxu0 }
0x2814   :  { %v1932_v30 = vrot.slane %v1927_v29, 4  ;;  %v3438_v31 = vpop.f32.mrb[17].mxu0  ;;  %v3099_v29 = vld [vmem:[#allocation12] ss:$0 sm:$0xff] }
0x2815   :  { %v3676_v31 = vpack.c.bf16 %v2171_v28, %v2170_v27 }
0x2816   :  { %v1934_v12 = vadd.f32 %v4497_v20, %v1932_v30 }
0x2818   :  { %v1935_v32 = vadd.f32 %v4502_v21, %v1934_v12 }
0x281a   :  { %3845 = vtanh.f32 %v1935_v32  ;;  %v3096_v35 = vmul.f32 -1.442695, %v1935_v32 }
0x281c   :  { %3847 = vpow2.f32 %v3096_v35  ;;  %v2173_v35 = vld [vmem:[#allocation9 + $0x18] sm:$0xff] }
0x2824   :  { %v3846_v33 = vpop.eup %3845 }
0x2825   :  { %1948 = vrot.lane.b32.xlu1 %v3846_v33, %s4091_s24  ;;  %v2172_v33 = vld [vmem:[#allocation9 + $0x10] sm:$0xff] }
0x2826   :  { %v3848_v36 = vpop.eup %3847 }
0x2827   :  { %v1939_v37 = vadd.f32 1.0, %v3848_v36  ;;  %v3679_v36 = vpack.c.bf16 %v2173_v35, %v2172_v33 }
0x2829   :  { %3849 = vrcp.f32 %v1939_v37  ;;  %v4642_v37 = vld [vmem:[#allocation8] ss:$0 sm:$0xff] }
0x2833   :  { %v3850_v38 = vpop.eup %3849 }
0x2834   :  { %v1946_v41 = vmul.f32 %v3850_v38, %v1944_v22 }
0x2897   :  { %v1949_v39 = vpop.permute.xlu1 %1948 }
0x2898   :  { %v1951_v40 = vmul.f32 %v3850_v38, %v1949_v39 }
0x289a   :  { %1953 = vrot.lane.b32.xlu0 %v1951_v40, %s4092_s3 }
0x290c   :  { %v1954_v42 = vpop.permute.xlu0 %1953 }
0x290d   :  { %v1956_v43 = vadd.f32 %v1954_v42, %v1946_v41 }
0x290f   :  { %3851 = vtanh.f32 %v1956_v43 }
0x2919   :  { %v3852_v44 = vpop.eup %3851 }
0x291a   :  { %1959 = vrot.lane.b32.xlu1 %v3852_v44, %s4091_s24 }
0x298c   :  { %v1960_v45 = vpop.permute.xlu1 %1959 }
0x298d   :  { %v1962_v46 = vmul.f32 %v3850_v38, %v1960_v45 }
0x298f   :  { %v1964_v47 = vrot.slane %v1962_v46, 4 }
0x2991   :  { %1965 = vrot.lane.b32.xlu0 %v1964_v47, %s4092_s3 }
0x2a03   :  { %v1966_v48 = vpop.permute.xlu0 %1965 }
0x2a04   :  { %3448 = vmatmul.mubr.msk.f32.vlgmr.msra.gmra.mrb[16].mxu1 %vm236_vm4, %v1966_v48 }
0x2a05   :  { %3469 = vmatprep.mubr.msk.f32.mxu1 %vm4089_vm0, %v4090_v1  ;;  %3671 = vmatpush3.bf16.msra.mxu1 %v4593_v61 }
0x2a06   :  { %3672 = vmatprep.subr.bf16.mxu1 %v4088_v0 }
0x2a09   :  { %3674 = vmatpush3.bf16.msra.mxu1 %v4597_v2 }
0x2a0a   :  { %3681 = vmatprep.subr.bf16.mxu1 %v4088_v0 }
0x2ad7   :  { %v2035_v49 = vpop.f32.mrb[16].mxu1 }
0x2ad8   :  { %v2040_v51 = vrot.slane %v2035_v49, 2  ;;  %v3449_v52 = vpop.f32.mrb[17].mxu1 }
0x2ada   :  { %v2042_v53 = vadd.f32 %v4497_v20, %v2040_v51  ;;  %v2052_v20 = vrot.slane %v1956_v43, 6  ;;  %v2346_v51 = vrot.slane %v4431_v55, 6  ;;  %v2169_v55 = vld [vmem:[%s4770_s10 + $0x18] sm:$0xff] }
0x2adc   :  { %v2043_v11 = vadd.f32 %v4502_v21, %v2042_v53 }
0x2ade   :  { %3853 = vtanh.f32 %v2043_v11  ;;  %v3098_v54 = vmul.f32 -1.442695, %v2043_v11 }
0x2ae0   :  { %3855 = vpow2.f32 %v3098_v54  ;;  %v2167_v54 = vld [vmem:[%s4770_s10 + $0x8] sm:$0xff] }
0x2ae8   :  { %v3854_v13 = vpop.eup %3853 }
0x2ae9   :  { %2056 = vrot.lane.b32.xlu1 %v3854_v13, %s4091_s24  ;;  %v2166_v13 = vld [vmem:[%s4770_s10] sm:$0xff] }
0x2aea   :  { %v3856_v56 = vpop.eup %3855 }
0x2aeb   :  { %v2047_v57 = vadd.f32 1.0, %v3856_v56  ;;  %v2168_v56 = vld [vmem:[%s4770_s10 + $0x10] sm:$0xff] }
0x2aed   :  { %3857 = vrcp.f32 %v2047_v57  ;;  %v4660_v57 = vpack.c.bf16 %v2167_v54, %v2166_v13 }
0x2af7   :  { %v3858_v50 = vpop.eup %3857 }
0x2af8   :  { %v2054_v21 = vmul.f32 %v3858_v50, %v2052_v20 }
0x2b5b   :  { %v2057_v34 = vpop.permute.xlu1 %2056 }
0x2b5c   :  { %v2059_v58 = vmul.f32 %v3858_v50, %v2057_v34 }
0x2b5e   :  { %2061 = vrot.lane.b32.xlu0 %v2059_v58, %s4092_s3 }
0x2bd0   :  { %v2062_v63 = vpop.permute.xlu0 %2061 }
0x2bd1   :  { %v4599_v3 = vadd.f32 %v2062_v63, %v2054_v21 }
0x2bd3   :  { %3859 = vtanh.f32 %v4599_v3 }
0x2bdd   :  { %v3860_v4 = vpop.eup %3859 }
0x2bde   :  { %2067 = vrot.lane.b32.xlu1 %v3860_v4, %s4091_s24 }
0x2be2   :  { %2181 = vrot.lane.b32.xlu1 %v2180_v16, %s4092_s3  ;;  %v2525_v16 = vrot.slane %v4599_v3, 6  ;;  %v2178_v3 = vld [vmem:[%s4775_s15 + $0x18] sm:$0xff] }
0x2c50   :  { %v2068_v17 = vpop.permute.xlu1 %2067 }
0x2c51   :  { %v2070_v18 = vmul.f32 %v3858_v50, %v2068_v17  ;;  %v4666_v50 = vpack.c.bf16 %v2169_v55, %v2168_v56 }
0x2c53   :  { %v2083_v19 = vrot.slane %v2070_v18, 6 }
0x2c54   :  { %v2182_v23 = vpop.permute.xlu1 %2181 }
0x2c55   :  { %2084 = vrot.lane.b32.xlu0 %v2083_v19, %s4092_s3  ;;  %3470 = vmatmul.mubr.msk.f32.vlgmr.msra.gmra.mrb[18].mxu1 %vm236_vm4, %v2182_v23  ;;  %v2175_v23 = vld [vmem:[%s4775_s15] sm:$0xff] }
0x2c56   :  { %3496 = vmatprep.mubr.msk.f32.mxu1 %vm4089_vm0, %v4090_v1  ;;  %3683 = vmatpush3.bf16.msra.mxu1 %v4660_v57 }
0x2c57   :  { %3684 = vmatprep.subr.bf16.mxu1 %v4088_v0 }
0x2c5a   :  { %3686 = vmatpush3.bf16.msra.mxu1 %v4666_v50 }
0x2c5b   :  { %3693 = vmatprep.subr.bf16.mxu1 %v4088_v0 }
0x2cc7   :  { %v2085_v25 = vpop.permute.xlu0 %2084 }
0x2cc8   :  { %3459 = vmatmul.mubr.msk.f32.vlgmr.msra.gmra.mrb[18].mxu0 %vm236_vm4, %v2085_v25 }
0x2cc9   :  { %3473 = vmatpush3.msk.msra.mxu0 %vm157_vm1, %v4625_v24  ;;  %3474 = vmatprep.mubr.msk.f32.mxu0 %vm4089_vm0, %v4090_v1 }
0x2cca   :  { %3675 = vmatprep.subr.bf16.mxu0 %v4088_v0 }
0x2d28   :  { %v2251_v7 = vpop.f32.mrb[18].mxu1 }
0x2d29   :  { %v3471_v26 = vpop.f32.mrb[19].mxu1 }
0x2d9b   :  { %v2154_v30 = vpop.f32.mrb[18].mxu0 }
0x2d9c   :  { %v2155_v12 = vadd.f32 %v3099_v29, %v2154_v30  ;;  %v3460_v32 = vpop.f32.mrb[19].mxu0 }
0x2d9e   :  { %2159 = vst.msk [vmem:[#allocation15] sm:$0x3] %vm2158_vm8, %v2155_v12  ;;  %3475 = vmatmul.mubr.msk.f32.vlgmr.msra.gmra.mrb[20].mxu0 %vm150_vm2, %v2155_v12  ;;  %v4720_v12 = vld [vmem:[#allocation14] ss:$0 sm:$0xff] }
0x2d9f   :  { %3677 = vmatpush3.bf16.msra.mxu0 %v3676_v31  ;;  %3485 = vmatprep.mubr.msk.f32.mxu0 %vm4089_vm0, %v4090_v1 }
0x2da0   :  { %3678 = vmatprep.subr.bf16.mxu0 %v4088_v0 }
0x2da3   :  { %3680 = vmatpush3.bf16.msra.mxu0 %v3679_v36 }
0x2da4   :  { %3687 = vmatprep.subr.bf16.mxu0 %v4088_v0 }
0x2da6   :  { %3486 = vmatmul.mubr.msk.f32.vlgmr.msra.gmra.mrb[22].mxu0 %vm236_vm4, %v2085_v25  ;;  %v2176_v25 = vld [vmem:[%s4775_s15 + $0x8] sm:$0xff] }
0x2da7   :  { %3507 = vmatprep.mubr.msk.f32.mxu0 %vm4089_vm0, %v4090_v1  ;;  %v3688_v26 = vpack.c.bf16 %v2176_v25, %v2175_v23 }
0x2da9   :  { %3689 = vmatpush3.bf16.msra.mxu0 %v3688_v26 }
0x2daa   :  { %3690 = vmatprep.subr.bf16.mxu0 %v4088_v0 }
0x2e71   :  { %v2327_v38 = vpop.f32.mrb[20].mxu0 }
0x2e72   :  { %v2328_v39 = vadd.f32 %v2327_v38, %v2251_v7  ;;  %v3476_v40 = vpop.f32.mrb[21].mxu0  ;;  %v2177_v7 = vld [vmem:[%s4775_s15 + $0x10] sm:$0xff]  ;;  %s4093_s15 = smov [#allocation15]  }
0x2e73   :  { %v3691_v27 = vpack.c.bf16 %v2178_v3, %v2177_v7  ;;  %s3047_s8 = sshll.u32 %s4093_s15, 4  ;;  %s3048_s8 = int_to_ptr.vmem [resolvable:$true] %s3047_s8 }
0x2e74   :  { %v2337_v22 = vadd.f32 %v4642_v37, %v2328_v39  ;;  %s4047_s11 = scalar_lea.vmem %s3048_s8, 96  ;;  %p4052_p1 = scmp.lt.s32.totalorder %s3048_s8, %s3048_s8 }
0x2e75   :  { %3692 = vmatpush3.bf16.msra.mxu0 %v3691_v27  ;;  %p4048_p0 = scmp.ne.s32.totalorder %s3048_s8, %s4047_s11  ;;  %p4053_p2 = scmp.lt.s32.totalorder %s4047_s11, %s4047_s11 }
0x2e76   :  { %3861 = vtanh.f32 %v2337_v22  ;;  %v3105_v44 = vmul.f32 -1.442695, %v2337_v22  ;;  %3521 = vmatprep.subr.mxu0 %v4090_v1 }
0x2e77   :  { %p4054_p3 = por %p4053_p2, %p4052_p1 }
0x2e78   :  { %3863 = vpow2.f32 %v3105_v44 }
0x2e79   :  { %v2431_v41 = vpop.f32.mrb[22].mxu0  ;;  %p4055_p4 = pnand %p4054_p3, %p4048_p0 }
0x2e7a   :  { %v3487_v42 = vpop.f32.mrb[23].mxu0 }
0x2e80   :  { %v3862_v43 = vpop.eup %3861 }
0x2e81   :  { %2350 = vrot.lane.b32.xlu0 %v3862_v43, %s4091_s24 }
0x2e82   :  { %v3864_v45 = vpop.eup %3863 }
0x2e83   :  { %v2341_v46 = vadd.f32 1.0, %v3864_v45 }
0x2e85   :  { %3865 = vrcp.f32 %v2341_v46 }
0x2e8f   :  { %v3866_v47 = vpop.eup %3865 }
0x2e90   :  { %v2348_v52 = vmul.f32 %v3866_v47, %v2346_v51 }
0x2ef3   :  { %v2351_v48 = vpop.permute.xlu0 %2350 }
0x2ef4   :  { %v2353_v49 = vmul.f32 %v3866_v47, %v2351_v48 }
0x2ef6   :  { %2355 = vrot.lane.b32.xlu1 %v2353_v49, %s4092_s3 }
0x2f68   :  { %v2356_v53 = vpop.permute.xlu1 %2355 }
0x2f69   :  { %v4648_v11 = vadd.f32 %v2356_v53, %v2348_v52 }
0x2f6b   :  { %3867 = vtanh.f32 %v4648_v11 }
0x2f75   :  { %v3868_v34 = vpop.eup %3867 }
0x2f76   :  { %2361 = vrot.lane.b32.xlu0 %v3868_v34, %s4091_s24 }
0x2fe8   :  { %v2362_v58 = vpop.permute.xlu0 %2361 }
0x2fe9   :  { %v2364_v59 = vmul.f32 %v3866_v47, %v2362_v58 }
0x2feb   :  { %2436 = vrot.lane.b32.xlu1 %v2364_v59, %s4092_s3 }
0x305d   :  { %v2437_v60 = vpop.permute.xlu1 %2436 }
0x305e   :  { %3497 = vmatmul.mubr.msk.f32.vlgmr.msra.gmra.mrb[20].mxu1 %vm236_vm4, %v2437_v60 }
0x305f   :  { %3695 = vmatpush3.bf16.msra.mxu1 %v4593_v61  ;;  %3518 = vmatprep.mubr.msk.f32.mxu1 %vm4089_vm0, %v4090_v1  ;;  %v4685_v61 = vld [vmem:[#allocation11] ss:$0 sm:$0xff] }
0x3060   :  { %3696 = vmatprep.subr.bf16.mxu1 %v4088_v0 }
0x3063   :  { %3698 = vmatpush3.bf16.msra.mxu1 %v4597_v2 }
0x3064   :  { %3699 = vmatprep.subr.bf16.mxu1 %v4088_v0 }
0x3066   :  { %3519 = vmatmul.mubr.msk.f32.vlgmr.msra.gmra.mrb[22].mxu1 %vm236_vm4, %v2437_v60 }
0x3067   :  { %3701 = vmatpush3.bf16.msra.mxu1 %v3676_v31  ;;  %3534 = vmatprep.mubr.msk.f32.mxu1 %vm4089_vm0, %v4090_v1 }
0x3068   :  { %3702 = vmatprep.subr.bf16.mxu1 %v4088_v0 }
0x306b   :  { %3704 = vmatpush3.bf16.msra.mxu1 %v3679_v36 }
0x306c   :  { %3711 = vmatprep.subr.bf16.mxu1 %v4088_v0 }
0x3131   :  { %v2506_v20 = vpop.f32.mrb[20].mxu1 }
0x3132   :  { %v2507_v21 = vadd.f32 %v2506_v20, %v2431_v41  ;;  %v3498_v14 = vpop.f32.mrb[21].mxu1 }
0x3134   :  { %v2516_v5 = vadd.f32 %v4685_v61, %v2507_v21 }
0x3136   :  { %3869 = vtanh.f32 %v2516_v5  ;;  %v3109_v6 = vmul.f32 -1.442695, %v2516_v5 }
0x3138   :  { %3871 = vpow2.f32 %v3109_v6 }
0x3139   :  { %v2693_v63 = vpop.f32.mrb[22].mxu1 }
0x313a   :  { %v3520_v2 = vpop.f32.mrb[23].mxu1 }
0x3140   :  { %v3870_v10 = vpop.eup %3869 }
0x3141   :  { %2529 = vrot.lane.b32.xlu0 %v3870_v10, %s4091_s24 }
0x3142   :  { %v3872_v62 = vpop.eup %3871 }
0x3143   :  { %v2520_v8 = vadd.f32 1.0, %v3872_v62 }
0x3145   :  { %3873 = vrcp.f32 %v2520_v8 }
0x314f   :  { %v3874_v9 = vpop.eup %3873 }
0x3150   :  { %v2527_v17 = vmul.f32 %v3874_v9, %v2525_v16 }
0x31b3   :  { %v2530_v15 = vpop.permute.xlu0 %2529 }
0x31b4   :  { %v2532_v4 = vmul.f32 %v3874_v9, %v2530_v15 }
0x31b6   :  { %2534 = vrot.lane.b32.xlu1 %v2532_v4, %s4092_s3 }
0x3228   :  { %v2535_v18 = vpop.permute.xlu1 %2534 }
0x3229   :  { %v4691_v19 = vadd.f32 %v2535_v18, %v2527_v17 }
0x322b   :  { %3875 = vtanh.f32 %v4691_v19 }
0x3235   :  { %v3876_v28 = vpop.eup %3875 }
0x3236   :  { %2540 = vrot.lane.b32.xlu0 %v3876_v28, %s4091_s24 }
0x32a8   :  { %v2541_v29 = vpop.permute.xlu0 %2540 }
0x32a9   :  { %v2543_v30 = vmul.f32 %v3874_v9, %v2541_v29 }
0x32ab   :  { %2551 = vrot.lane.b32.xlu1 %v2543_v30, %s4092_s3 }
0x331d   :  { %v2552_v31 = vpop.permute.xlu1 %2551 }
0x331e   :  { %3508 = vmatmul.mubr.msk.f32.vlgmr.msra.gmra.mrb[24].mxu0 %vm236_vm4, %v2552_v31  ;;  %3535 = vmatmul.mubr.msk.f32.vlgmr.msra.gmra.mrb[24].mxu1 %vm236_vm4, %v2552_v31 }
0x331f   :  { %3522 = vmatpush3.msk.msra.mxu0 %vm157_vm1, %v4625_v24  ;;  %3523 = vmatprep.mubr.msk.f32.mxu0 %vm4089_vm0, %v4090_v1 }
0x3320   :  { %3705 = vmatprep.subr.bf16.mxu0 %v4088_v0  ;;  %3713 = vmatpush3.bf16.msra.mxu1 %v3688_v26 }
0x3321   :  { %3714 = vmatprep.subr.bf16.mxu1 %v4088_v0  ;;  %3556 = vmatprep.mubr.msk.f32.mxu1 %vm4089_vm0, %v4090_v1 }
0x3324   :  { %3716 = vmatpush3.bf16.msra.mxu1 %v3691_v27 }
0x33f1   :  { %v2621_v32 = vpop.f32.mrb[24].mxu0  ;;  %v2861_v33 = vpop.f32.mrb[24].mxu1 }
0x33f2   :  { %v2622_v35 = vadd.f32 %v4720_v12, %v2621_v32  ;;  %v3509_v36 = vpop.f32.mrb[25].mxu0  ;;  %v3536_v24 = vpop.f32.mrb[25].mxu1 }
0x33f4   :  { %2626 = vst.msk [vmem:[#allocation15 + $0x2] sm:$0x3] %vm2158_vm8, %v2622_v35  ;;  %3524 = vmatmul.mubr.msk.f32.vlgmr.msra.gmra.mrb[26].mxu0 %vm150_vm2, %v2622_v35 }
0x33f5   :  { %3707 = vmatpush3.bf16.msra.mxu0 %v4660_v57  ;;  %3545 = vmatprep.mubr.msk.f32.mxu0 %vm4089_vm0, %v4090_v1 }
0x33f6   :  { %3708 = vmatprep.subr.bf16.mxu0 %v4088_v0 }
0x33f9   :  { %3710 = vmatpush3.bf16.msra.mxu0 %v4666_v50 }
0x34c7   :  { %v2766_v38 = vpop.f32.mrb[26].mxu0 }
0x34c8   :  { %v2767_v39 = vadd.f32 %v2766_v38, %v2693_v63  ;;  %v3525_v40 = vpop.f32.mrb[27].mxu0 }
0x34ca   :  { %v2770_v22 = vadd.f32 %v4642_v37, %v2767_v39 }
0x34cc   :  { %3877 = vtanh.f32 %v2770_v22  ;;  %v3115_v42 = vmul.f32 -1.442695, %v2770_v22 }
0x34ce   :  { %3879 = vpow2.f32 %v3115_v42 }
0x34d6   :  { %v3878_v41 = vpop.eup %3877 }
0x34d7   :  { %2780 = vrot.lane.b32.xlu0 %v3878_v41, %s4091_s24 }
0x34d8   :  { %v3880_v43 = vpop.eup %3879 }
0x34d9   :  { %v2774_v44 = vadd.f32 1.0, %v3880_v43 }
0x34db   :  { %3881 = vrcp.f32 %v2774_v44 }
0x34e5   :  { %v3882_v45 = vpop.eup %3881 }
0x34e6   :  { %v2778_v0 = vmul.f32 %v3882_v45, %v4648_v11 }
0x3549   :  { %v2781_v1 = vpop.permute.xlu0 %2780 }
0x354a   :  { %v2783_v46 = vmul.f32 %v3882_v45, %v2781_v1 }
0x354c   :  { %2785 = vrot.lane.b32.xlu1 %v2783_v46, %s4092_s3 }
0x35be   :  { %v2786_v47 = vpop.permute.xlu1 %2785 }
0x35bf   :  { %v2788_v48 = vadd.f32 %v2786_v47, %v2778_v0 }
0x35c1   :  { %3883 = vtanh.f32 %v2788_v48 }
0x35cb   :  { %v3884_v37 = vpop.eup %3883 }
0x35cc   :  { %2791 = vrot.lane.b32.xlu0 %v3884_v37, %s4091_s24 }
0x363e   :  { %v2792_v49 = vpop.permute.xlu0 %2791 }
0x363f   :  { %v2794_v51 = vmul.f32 %v3882_v45, %v2792_v49 }
0x3641   :  { %2866 = vrot.lane.b32.xlu1 %v2794_v51, %s4092_s3 }
0x36b3   :  { %v2867_v52 = vpop.permute.xlu1 %2866 }
0x36b4   :  { %3546 = vmatmul.mubr.msk.f32.vlgmr.msra.gmra.mrb[28].mxu0 %vm236_vm4, %v2867_v52 }
0x3787   :  { %v2936_v53 = vpop.f32.mrb[28].mxu0 }
0x3788   :  { %v2937_v13 = vadd.f32 %v2936_v53, %v2861_v33  ;;  %v3547_v54 = vpop.f32.mrb[29].mxu0 }
0x378a   :  { %v2940_v56 = vadd.f32 %v4685_v61, %v2937_v13 }
0x378c   :  { %3885 = vtanh.f32 %v2940_v56  ;;  %v3118_v57 = vmul.f32 -1.442695, %v2940_v56 }
0x378e   :  { %3887 = vpow2.f32 %v3118_v57 }
0x3796   :  { %v3886_v11 = vpop.eup %3885 }
0x3797   :  { %2950 = vrot.lane.b32.xlu0 %v3886_v11, %s4091_s24 }
0x3798   :  { %v3888_v55 = vpop.eup %3887 }
0x3799   :  { %v2944_v50 = vadd.f32 1.0, %v3888_v55 }
0x379b   :  { %3889 = vrcp.f32 %v2944_v50 }
0x37a5   :  { %v3890_v34 = vpop.eup %3889 }
0x37a6   :  { %v2948_v60 = vmul.f32 %v3890_v34, %v4691_v19 }
0x3809   :  { %v2951_v58 = vpop.permute.xlu0 %2950 }
0x380a   :  { %v2953_v59 = vmul.f32 %v3890_v34, %v2951_v58 }
0x380c   :  { %2955 = vrot.lane.b32.xlu1 %v2953_v59, %s4092_s3 }
0x387e   :  { %v2956_v20 = vpop.permute.xlu1 %2955 }
0x387f   :  { %v2958_v21 = vadd.f32 %v2956_v20, %v2948_v60 }
0x3881   :  { %3891 = vtanh.f32 %v2958_v21 }
0x388b   :  { %v3892_v61 = vpop.eup %3891 }
0x388c   :  { %2961 = vrot.lane.b32.xlu0 %v3892_v61, %s4091_s24 }
0x38fe   :  { %v2962_v14 = vpop.permute.xlu0 %2961 }
0x38ff   :  { %v2964_v5 = vmul.f32 %v3890_v34, %v2962_v14 }
0x3901   :  { %2966 = vrot.lane.b32.xlu1 %v2964_v5, %s4092_s3 }
0x3973   :  { %v2967_v63 = vpop.permute.xlu1 %2966 }
0x3974   :  { %3557 = vmatmul.mubr.msk.f32.vlgmr.msra.gmra.mrb[26].mxu1 %vm236_vm4, %v2967_v63 }
0x3a47   :  { %v3036_v2 = vpop.f32.mrb[26].mxu1 }
0x3a48   :  { %v3037_v10 = vadd.f32 %v4720_v12, %v3036_v2  ;;  %v3558_v6 = vpop.f32.mrb[27].mxu1 }
0x3a4a   :  { %3041 = vst.msk [vmem:[#allocation15 + $0x4] sm:$0x3] %vm2158_vm8, %v3037_v10 }
0x3a4b   :  { %4058 = shalt.err (!%p4055_p4)
}
0x3a4c   :  { %s4785_s5 = sld [smem:[#allocation23_spill]] }
0x3a52   :  { %s4059_s6 = scalar_lea.hbm %s4785_s5, 96 }
0x3a53   :  { %p4060_p5 = scmp.ne.s32.totalorder %s4785_s5, %s4059_s6  ;;  %p4063_p6 = scmp.lt.u32.totalorder %s4059_s6, %s4785_s5 }
0x3a55   :  { %p4065_p7 = pnand %p4063_p6, %p4060_p5 }
0x3a57   :  { %4068 = shalt.err (!%p4065_p7)
}
0x3a58   :  { %s4094_s21 = smov 2  }
0x3a59   :  { %3053 = dma.vmem_to_hbm [thread:$0]  %s3048_s8, 96, %s4785_s5, [#allocation5], %s4092_s3, %s4092_s3, %s4094_s21  }
0x3a5a   :  { %4077 = dma.done.wait [#allocation5], 96  }
0x3a5b   :  { %4078 = vsyncadd [#allocation5], 4294967200 }
0x3a5c   :  { %3057 = vsyncpa [#allocation4], 1 }
0x3a5d   :  { %3058 = vsyncpa [#allocation7], 1 }
0x3a5e   :  { %3059 = vsyncpa [#allocation10], 1 }
0x3a5f   :  { %3060 = vsyncpa [#allocation13], 1 }
0x3a60   :  { %3061 = vsyncpa [#allocation5], 1 }

</bundles_post_ra>
